<compile_context>
chip_gen: v6e
topology: v6e:2x2x1
jax: 0.10.0
libtpu: 0.0.40
codegen_flags: <defaults>
</compile_context>

<pallas_src>
import functools
import math

import jax
import jax.numpy as jnp
from jax.experimental import pallas as pl
from jax.experimental.pallas import tpu as pltpu

EPS = 1e-6


# ---------------------------------------------------------------------------
# In-kernel math (Mosaic-friendly: f32 VPU math, bf16 MXU inputs).
# ---------------------------------------------------------------------------
def _layer_norm_k(x, a, b):
    # Annotated-transformer LayerNorm: unbiased std, a*(x-mean)/(std+eps)+b.
    d = x.shape[-1]
    mean = jnp.mean(x, axis=-1, keepdims=True)
    var = jnp.sum((x - mean) ** 2, axis=-1, keepdims=True) * (1.0 / (d - 1))
    inv = pl.reciprocal(jnp.sqrt(var) + EPS, approx=True)   # EUP, not VPU divide
    return a * (x - mean) * inv + b


def _mha_k(q_in, kv_in, mask, wq, wk, wv, wo, bq, bk, bv, bo, num_heads):
    """Multi-head attention with heads as a leading batch dim (no transposes).

    q_in: (T, D) f32, kv_in: (S, D) f32, mask: (T, S) or (1, S) float {0,1}.
    wq/wk/wv: (H, D, dk) bf16, wo: (H, dk, D) bf16.
    bq/bk/bv: (H, 1, dk) f32, bo: (1, D) f32.
    """
    T, D = q_in.shape
    S = kv_in.shape[0]
    H = num_heads
    dk = D // H

    qb = jnp.broadcast_to(q_in.astype(jnp.bfloat16)[None], (H, T, D))
    kb = jnp.broadcast_to(kv_in.astype(jnp.bfloat16)[None], (H, S, D))

    # Projections: one batched contraction each (batch dim = heads, leading).
    q = jnp.einsum('htd,hdk->htk', qb, wq,
                   preferred_element_type=jnp.float32) + bq          # (H,T,dk)
    k = jnp.einsum('hsd,hdk->hsk', kb, wk,
                   preferred_element_type=jnp.float32) + bk          # (H,S,dk)
    v = jnp.einsum('hsd,hdk->hsk', kb, wv,
                   preferred_element_type=jnp.float32) + bv          # (H,S,dk)

    scale = 1.0 / math.sqrt(dk)
    s = jnp.einsum('htk,hsk->hts', q.astype(jnp.bfloat16), k.astype(jnp.bfloat16),
                   preferred_element_type=jnp.float32) * scale       # (H,T,S)
    s = jnp.where(mask[None] > 0, s, jnp.float32(-1e9))              # masked_fill

    # Softmax in f32 with EUP reciprocal.
    s_max = jnp.max(s, axis=-1, keepdims=True)
    e = jnp.exp(s - s_max)
    p = e * pl.reciprocal(jnp.sum(e, axis=-1, keepdims=True), approx=True)

    o = jnp.einsum('hts,hsk->htk', p.astype(jnp.bfloat16), v.astype(jnp.bfloat16),
                   preferred_element_type=jnp.float32)               # (H,T,dk)
    oh = jnp.einsum('htk,hkd->htd', o.astype(jnp.bfloat16), wo,
                    preferred_element_type=jnp.float32)              # (H,T,D)
    return jnp.sum(oh, axis=0) + bo                                  # (T,D)


# ---------------------------------------------------------------------------
# Fused decoder kernel: grid = (batch, layer).
# ---------------------------------------------------------------------------
def decoder_kernel(x_ref, mem_ref, tgt_mask_ref, src_mask_ref,
                   wqkv_ref, wo_ref, bqkv_ref, bo_ref,
                   w1_ref, b1_ref, w2_ref, b2_ref,
                   na_ref, nb_ref, fa_ref, fb_ref,
                   out_ref, x_acc, *, num_heads, num_layers):
    l = pl.program_id(1)

    @pl.when(l == 0)
    def _():
        x_acc[...] = x_ref[0].astype(jnp.float32)

    x = x_acc[...]               # (T, D) f32, resident across layers
    m = mem_ref[0]               # (S, D) f32
    tmask = tgt_mask_ref[0]      # (T, T)
    smask = src_mask_ref[0]      # (1, S)

    # ---- sublayer 0: self-attention --------------------------------------
    xn = _layer_norm_k(x, na_ref[0, 0], nb_ref[0, 0])
    x = x + _mha_k(xn, xn, tmask,
                   wqkv_ref[0, 0], wqkv_ref[0, 1], wqkv_ref[0, 2], wo_ref[0, 0],
                   bqkv_ref[0, 0], bqkv_ref[0, 1], bqkv_ref[0, 2], bo_ref[0, 0],
                   num_heads)

    # ---- sublayer 1: source attention over encoder memory ----------------
    xn = _layer_norm_k(x, na_ref[0, 1], nb_ref[0, 1])
    x = x + _mha_k(xn, m, smask,
                   wqkv_ref[0, 3], wqkv_ref[0, 4], wqkv_ref[0, 5], wo_ref[0, 1],
                   bqkv_ref[0, 3], bqkv_ref[0, 4], bqkv_ref[0, 5], bo_ref[0, 1],
                   num_heads)

    # ---- sublayer 2: position-wise feed-forward ---------------------------
    xn = _layer_norm_k(x, na_ref[0, 2], nb_ref[0, 2])
    h = jnp.maximum(
        jnp.dot(xn.astype(jnp.bfloat16), w1_ref[0],
                preferred_element_type=jnp.float32) + b1_ref[0], 0.0)
    x = x + jnp.dot(h.astype(jnp.bfloat16), w2_ref[0],
                    preferred_element_type=jnp.float32) + b2_ref[0]

    x_acc[...] = x

    @pl.when(l == num_layers - 1)
    def _():
        # Final LayerNorm fused into the last layer step.
        out_ref[0] = _layer_norm_k(x, fa_ref[...], fb_ref[...]).astype(out_ref.dtype)


# ---------------------------------------------------------------------------
# Wrapper.
# ---------------------------------------------------------------------------
def decoder_forward(x, memory, src_mask, tgt_mask, params, num_heads):
    """Pallas implementation of Decoder.forward(x, memory, src_mask, tgt_mask).

    src_mask: (B, 1, S) float {0,1}; tgt_mask: (B, T, T) float {0,1}.
    """
    B, T, D = x.shape
    S = memory.shape[1]
    N = params["wqkv"].shape[0]
    F = params["ffn_w1"].shape[-1]
    H = num_heads
    dk = D // H

    kernel = functools.partial(decoder_kernel, num_heads=H, num_layers=N)
    return pl.pallas_call(
        kernel,
        out_shape=jax.ShapeDtypeStruct((B, T, D), x.dtype),
        grid=(B, N),
        in_specs=[
            pl.BlockSpec((1, T, D), lambda b, l: (b, 0, 0)),              # x
            pl.BlockSpec((1, S, D), lambda b, l: (b, 0, 0)),              # memory
            pl.BlockSpec((1, T, T), lambda b, l: (b, 0, 0)),              # tgt_mask
            pl.BlockSpec((1, 1, S), lambda b, l: (b, 0, 0)),              # src_mask
            pl.BlockSpec((1, 6, H, D, dk), lambda b, l: (l, 0, 0, 0, 0)),  # Wq/k/v
            pl.BlockSpec((1, 2, H, dk, D), lambda b, l: (l, 0, 0, 0, 0)),  # Wo
            pl.BlockSpec((1, 6, H, 1, dk), lambda b, l: (l, 0, 0, 0, 0)),  # bq/k/v
            pl.BlockSpec((1, 2, 1, D), lambda b, l: (l, 0, 0, 0)),         # bo
            pl.BlockSpec((1, D, F), lambda b, l: (l, 0, 0)),              # ffn w1
            pl.BlockSpec((1, 1, F), lambda b, l: (l, 0, 0)),              # ffn b1
            pl.BlockSpec((1, F, D), lambda b, l: (l, 0, 0)),              # ffn w2
            pl.BlockSpec((1, 1, D), lambda b, l: (l, 0, 0)),              # ffn b2
            pl.BlockSpec((1, 3, 1, D), lambda b, l: (l, 0, 0, 0)),        # norm a
            pl.BlockSpec((1, 3, 1, D), lambda b, l: (l, 0, 0, 0)),        # norm b
            pl.BlockSpec((1, D), lambda b, l: (0, 0)),                    # final a
            pl.BlockSpec((1, D), lambda b, l: (0, 0)),                    # final b
        ],
        out_specs=pl.BlockSpec((1, T, D), lambda b, l: (b, 0, 0)),
        scratch_shapes=[pltpu.VMEM((T, D), jnp.float32)],
        compiler_params=pltpu.CompilerParams(
            dimension_semantics=("parallel", "arbitrary")),
    )(x, memory, tgt_mask, src_mask,
      params["wqkv"], params["wo"], params["bqkv"], params["bo"],
      params["ffn_w1"], params["ffn_b1"], params["ffn_w2"], params["ffn_b2"],
      params["norm_a"], params["norm_b"], params["final_a"], params["final_b"])


# ---------------------------------------------------------------------------
# Pure-JAX f32 reference (exact math, same head-major weight layout).
# ---------------------------------------------------------------------------
def _layer_norm_ref(x, a, b):
    d = x.shape[-1]
    mean = jnp.mean(x, axis=-1, keepdims=True)
    var = jnp.sum((x - mean) ** 2, axis=-1, keepdims=True) / (d - 1)
    std = jnp.sqrt(var)
    return a * (x - mean) / (std + EPS) + b


def _mha_ref(q_in, kv_in, mask, wq, wk, wv, wo, bq, bk, bv, bo):
    dk = wq.shape[-1]
    q = jnp.einsum('td,hdk->htk', q_in, wq) + bq
    k = jnp.einsum('sd,hdk->hsk', kv_in, wk) + bk
    v = jnp.einsum('sd,hdk->hsk', kv_in, wv) + bv
    s = jnp.einsum('htk,hsk->hts', q, k) / math.sqrt(dk)
    s = jnp.where(mask[None] > 0, s, -1e9)
    p = jax.nn.softmax(s, axis=-1)
    o = jnp.einsum('hts,hsk->htk', p, v)
    return jnp.einsum('htk,hkd->td', o, wo) + bo


def decoder_forward_ref(x, memory, src_mask, tgt_mask, params, num_heads):
    del num_heads  # encoded in the head-major weight layout
    N = params["wqkv"].shape[0]

    def one_batch(xb, mb, tmb, smb):
        for li in range(N):
            wqkv = params["wqkv"][li].astype(jnp.float32)
            wo = params["wo"][li].astype(jnp.float32)
            bqkv = params["bqkv"][li]
            bo = params["bo"][li]
            w1 = params["ffn_w1"][li].astype(jnp.float32)
            b1 = params["ffn_b1"][li]
            w2 = params["ffn_w2"][li].astype(jnp.float32)
            b2 = params["ffn_b2"][li]
            na = params["norm_a"][li]
            nb = params["norm_b"][li]

            xn = _layer_norm_ref(xb, na[0], nb[0])
            xb = xb + _mha_ref(xn, xn, tmb, wqkv[0], wqkv[1], wqkv[2], wo[0],
                               bqkv[0], bqkv[1], bqkv[2], bo[0])
            xn = _layer_norm_ref(xb, na[1], nb[1])
            xb = xb + _mha_ref(xn, mb, smb, wqkv[3], wqkv[4], wqkv[5], wo[1],
                               bqkv[3], bqkv[4], bqkv[5], bo[1])
            xn = _layer_norm_ref(xb, na[2], nb[2])
            h = jnp.maximum(xn @ w1 + b1, 0.0)
            xb = xb + h @ w2 + b2
        return _layer_norm_ref(xb, params["final_a"], params["final_b"])

    return jax.vmap(one_batch)(x, memory, tgt_mask, src_mask)


# ---------------------------------------------------------------------------
# Deterministic synthetic parameter init (stacked over layers, head-major,
# bf16 matmul weights / f32 biases & norm params).
# ---------------------------------------------------------------------------
def init_params(key, num_layers, d_model, d_ff, num_heads):
    N, D, F, H = num_layers, d_model, d_ff, num_heads
    dk = D // H
    ks = jax.random.split(key, 8)

    wqkv = 0.05 * jax.random.normal(ks[0], (N, 6, D, D), jnp.float32)
    wo = 0.05 * jax.random.normal(ks[1], (N, 2, D, D), jnp.float32)
    w1 = 0.05 * jax.random.normal(ks[2], (N, D, F), jnp.float32)
    w2 = 0.05 * jax.random.normal(ks[3], (N, F, D), jnp.float32)

    # Head-major repack (host-side, once): Wq (D,D) -> (H, D, dk); Wo -> (H, dk, D).
    wqkv_h = wqkv.reshape(N, 6, D, H, dk).transpose(0, 1, 3, 2, 4)
    wo_h = wo.reshape(N, 2, H, dk, D)

    return dict(
        wqkv=wqkv_h.astype(jnp.bfloat16),
        wo=wo_h.astype(jnp.bfloat16),
        bqkv=0.02 * jax.random.normal(ks[4], (N, 6, H, 1, dk), jnp.float32),
        bo=0.02 * jax.random.normal(ks[5], (N, 2, 1, D), jnp.float32),
        ffn_w1=w1.astype(jnp.bfloat16),
        ffn_b1=0.02 * jax.random.normal(ks[6], (N, 1, F), jnp.float32),
        ffn_w2=w2.astype(jnp.bfloat16),
        ffn_b2=0.02 * jax.random.normal(ks[7], (N, 1, D), jnp.float32),
        norm_a=jnp.ones((N, 3, 1, D), jnp.float32),
        norm_b=jnp.zeros((N, 3, 1, D), jnp.float32),
        final_a=jnp.ones((1, D), jnp.float32),
        final_b=jnp.zeros((1, D), jnp.float32),
    )


if __name__ == "__main__":
    B, T, S, D, F, H, N = 2, 8, 8, 32, 64, 4, 2

    key = jax.random.PRNGKey(0)
    kx, km, kp = jax.random.split(key, 3)
    x = jax.random.normal(kx, (B, T, D), jnp.float32)
    memory = jax.random.normal(km, (B, S, D), jnp.float32)

    # tgt_mask: causal (subsequent) mask, (B, T, T); src_mask: pad mask (B, 1, S)
    # masking out the last 2 source positions of batch element 1.
    tgt_mask = jnp.broadcast_to(jnp.tril(jnp.ones((T, T), jnp.float32)), (B, T, T))
    src_mask = jnp.ones((B, 1, S), jnp.float32).at[1, :, S - 2:].set(0.0)

    params = init_params(kp, N, D, F, H)

    out = decoder_forward(x, memory, src_mask, tgt_mask, params, H)
    out = jax.block_until_ready(out)

    ref = decoder_forward_ref(x, memory, src_mask, tgt_mask, params, H)
    assert out.shape == (B, T, D)
    max_err = float(jnp.max(jnp.abs(out - ref)))
    assert jnp.allclose(out, ref, atol=5e-2, rtol=5e-2), f"mismatch vs ref: {max_err}"

    print("KERNEL_OK")
</pallas_src>

<mosaic_0001>
module attributes {stable_mosaic.version = 11 : i64} {
  func.func @decoder_kernel(%arg0: i32, %arg1: i32, %arg2: memref<1x8x32xf32, #tpu.memory_space<vmem>>, %arg3: memref<1x8x32xf32, #tpu.memory_space<vmem>>, %arg4: memref<1x8x8xf32, #tpu.memory_space<vmem>>, %arg5: memref<1x1x8xf32, #tpu.memory_space<vmem>>, %arg6: memref<1x6x4x32x8xbf16, #tpu.memory_space<vmem>>, %arg7: memref<1x2x4x8x32xbf16, #tpu.memory_space<vmem>>, %arg8: memref<1x6x4x1x8xf32, #tpu.memory_space<vmem>>, %arg9: memref<1x2x1x32xf32, #tpu.memory_space<vmem>>, %arg10: memref<1x32x64xbf16, #tpu.memory_space<vmem>>, %arg11: memref<1x1x64xf32, #tpu.memory_space<vmem>>, %arg12: memref<1x64x32xbf16, #tpu.memory_space<vmem>>, %arg13: memref<1x1x32xf32, #tpu.memory_space<vmem>>, %arg14: memref<1x3x1x32xf32, #tpu.memory_space<vmem>>, %arg15: memref<1x3x1x32xf32, #tpu.memory_space<vmem>>, %arg16: memref<1x32xf32, #tpu.memory_space<vmem>>, %arg17: memref<1x32xf32, #tpu.memory_space<vmem>>, %arg18: memref<1x8x32xf32, #tpu.memory_space<vmem>>, %arg19: memref<8x32xf32, #tpu.memory_space<vmem>>) attributes {dimension_semantics = [#tpu.dimension_semantics<parallel>, #tpu.dimension_semantics<arbitrary>], iteration_bounds = array<i64: 2, 2>, scalar_prefetch = 0 : i64, scratch_operands = 1 : i64, tpu.core_type = #tpu.core_type<tc>, window_params = [{transform_indices = @transform_0, window_bounds = array<i64: 1, 8, 32>}, {transform_indices = @transform_1, window_bounds = array<i64: 1, 8, 32>}, {transform_indices = @transform_2, window_bounds = array<i64: 1, 8, 8>}, {transform_indices = @transform_3, window_bounds = array<i64: 1, 1, 8>}, {transform_indices = @transform_4, window_bounds = array<i64: 1, 6, 4, 32, 8>}, {transform_indices = @transform_5, window_bounds = array<i64: 1, 2, 4, 8, 32>}, {transform_indices = @transform_6, window_bounds = array<i64: 1, 6, 4, 1, 8>}, {transform_indices = @transform_7, window_bounds = array<i64: 1, 2, 1, 32>}, {transform_indices = @transform_8, window_bounds = array<i64: 1, 32, 64>}, {transform_indices = @transform_9, window_bounds = array<i64: 1, 1, 64>}, {transform_indices = @transform_10, window_bounds = array<i64: 1, 64, 32>}, {transform_indices = @transform_11, window_bounds = array<i64: 1, 1, 32>}, {transform_indices = @transform_12, window_bounds = array<i64: 1, 3, 1, 32>}, {transform_indices = @transform_13, window_bounds = array<i64: 1, 3, 1, 32>}, {pipeline_mode = #tpu.pipeline_mode<synchronous>, transform_indices = @transform_14, window_bounds = array<i64: 1, 32>}, {pipeline_mode = #tpu.pipeline_mode<synchronous>, transform_indices = @transform_15, window_bounds = array<i64: 1, 32>}, {transform_indices = @transform_16, window_bounds = array<i64: 1, 8, 32>}]} {
    %c0_i32 = arith.constant 0 : i32
    %0 = arith.cmpi eq, %arg1, %c0_i32 : i32
    %1 = arith.extui %0 : i1 to i32
    %c0_i32_0 = arith.constant 0 : i32
    %2 = arith.cmpi ne, %1, %c0_i32_0 : i32
    scf.if %2 {
      %c0_164 = arith.constant 0 : index
      %c0_165 = arith.constant 0 : index
      %c0_166 = arith.constant 0 : index
      %242 = vector.load %arg2[%c0_164, %c0_165, %c0_166] : memref<1x8x32xf32, #tpu.memory_space<vmem>>, vector<1x8x32xf32>
      %243 = vector.shape_cast %242 : vector<1x8x32xf32> to vector<8x32xf32>
      %c0_167 = arith.constant 0 : index
      %c0_168 = arith.constant 0 : index
      %244 = vector.load %arg19[%c0_167, %c0_168] : memref<8x32xf32, #tpu.memory_space<vmem>>, vector<8x32xf32>
      tpu.vector_store %arg19[%c0_167, %c0_168], %243 {strides = array<i32>} : memref<8x32xf32, #tpu.memory_space<vmem>>, vector<8x32xf32>,
    } else {
    }
    %c0 = arith.constant 0 : index
    %c0_1 = arith.constant 0 : index
    %3 = vector.load %arg19[%c0, %c0_1] : memref<8x32xf32, #tpu.memory_space<vmem>>, vector<8x32xf32>
    %c0_2 = arith.constant 0 : index
    %c0_3 = arith.constant 0 : index
    %c0_4 = arith.constant 0 : index
    %4 = vector.load %arg3[%c0_2, %c0_3, %c0_4] : memref<1x8x32xf32, #tpu.memory_space<vmem>>, vector<1x8x32xf32>
    %5 = vector.shape_cast %4 : vector<1x8x32xf32> to vector<8x32xf32>
    %c0_5 = arith.constant 0 : index
    %c0_6 = arith.constant 0 : index
    %c0_7 = arith.constant 0 : index
    %6 = vector.load %arg4[%c0_5, %c0_6, %c0_7] : memref<1x8x8xf32, #tpu.memory_space<vmem>>, vector<1x8x8xf32>
    %7 = vector.shape_cast %6 : vector<1x8x8xf32> to vector<8x8xf32>
    %c0_8 = arith.constant 0 : index
    %c0_9 = arith.constant 0 : index
    %c0_10 = arith.constant 0 : index
    %8 = vector.load %arg5[%c0_8, %c0_9, %c0_10] : memref<1x1x8xf32, #tpu.memory_space<vmem>>, vector<1x1x8xf32>
    %9 = vector.shape_cast %8 : vector<1x1x8xf32> to vector<1x8xf32>
    %c0_11 = arith.constant 0 : index
    %c0_12 = arith.constant 0 : index
    %c0_13 = arith.constant 0 : index
    %c0_14 = arith.constant 0 : index
    %10 = vector.load %arg14[%c0_11, %c0_12, %c0_13, %c0_14] : memref<1x3x1x32xf32, #tpu.memory_space<vmem>>, vector<1x1x1x32xf32>
    %11 = vector.shape_cast %10 : vector<1x1x1x32xf32> to vector<1x32xf32>
    %c0_15 = arith.constant 0 : index
    %c0_16 = arith.constant 0 : index
    %c0_17 = arith.constant 0 : index
    %c0_18 = arith.constant 0 : index
    %12 = vector.load %arg15[%c0_15, %c0_16, %c0_17, %c0_18] : memref<1x3x1x32xf32, #tpu.memory_space<vmem>>, vector<1x1x1x32xf32>
    %13 = vector.shape_cast %12 : vector<1x1x1x32xf32> to vector<1x32xf32>
    %cst = arith.constant dense<0.000000e+00> : vector<8xf32>
    %14 = vector.multi_reduction <add>, %3, %cst [1] : vector<8x32xf32> to vector<8xf32>
    %15 = vector.shape_cast %14 : vector<8xf32> to vector<8x1xf32>
    %cst_19 = arith.constant 3.200000e+01 : f32
    %16 = vector.broadcast %cst_19 : f32 to vector<8x1xf32>
    %17 = arith.divf %15, %16 : vector<8x1xf32>
    %18 = vector.broadcast %17 : vector<8x1xf32> to vector<8x32xf32>
    %19 = arith.subf %3, %18 : vector<8x32xf32>
    %20 = arith.mulf %19, %19 : vector<8x32xf32>
    %cst_20 = arith.constant dense<0.000000e+00> : vector<8xf32>
    %21 = vector.multi_reduction <add>, %20, %cst_20 [1] : vector<8x32xf32> to vector<8xf32>
    %22 = vector.shape_cast %21 : vector<8xf32> to vector<8x1xf32>
    %cst_21 = arith.constant 0.0322580636 : f32
    %23 = vector.broadcast %cst_21 : f32 to vector<8x1xf32>
    %24 = arith.mulf %22, %23 : vector<8x1xf32>
    %25 = math.sqrt %24 : vector<8x1xf32>
    %cst_22 = arith.constant 9.99999997E-7 : f32
    %26 = vector.broadcast %cst_22 : f32 to vector<8x1xf32>
    %27 = arith.addf %25, %26 : vector<8x1xf32>
    %28 = tpu.reciprocal %27 {approx = true} : vector<8x1xf32> -> vector<8x1xf32>
    %29 = vector.broadcast %17 : vector<8x1xf32> to vector<8x32xf32>
    %30 = arith.subf %3, %29 : vector<8x32xf32>
    %31 = vector.broadcast %11 : vector<1x32xf32> to vector<8x32xf32>
    %32 = arith.mulf %31, %30 : vector<8x32xf32>
    %33 = vector.broadcast %28 : vector<8x1xf32> to vector<8x32xf32>
    %34 = arith.mulf %32, %33 : vector<8x32xf32>
    %35 = vector.broadcast %13 : vector<1x32xf32> to vector<8x32xf32>
    %36 = arith.addf %34, %35 : vector<8x32xf32>
    %c0_23 = arith.constant 0 : index
    %c0_24 = arith.constant 0 : index
    %c0_25 = arith.constant 0 : index
    %c0_26 = arith.constant 0 : index
    %c0_27 = arith.constant 0 : index
    %37 = vector.load %arg6[%c0_23, %c0_24, %c0_25, %c0_26, %c0_27] : memref<1x6x4x32x8xbf16, #tpu.memory_space<vmem>>, vector<1x1x4x32x8xbf16>
    %38 = vector.shape_cast %37 : vector<1x1x4x32x8xbf16> to vector<4x32x8xbf16>
    %c0_28 = arith.constant 0 : index
    %c1 = arith.constant 1 : index
    %c0_29 = arith.constant 0 : index
    %c0_30 = arith.constant 0 : index
    %c0_31 = arith.constant 0 : index
    %39 = vector.load %arg6[%c0_28, %c1, %c0_29, %c0_30, %c0_31] : memref<1x6x4x32x8xbf16, #tpu.memory_space<vmem>>, vector<1x1x4x32x8xbf16>
    %40 = vector.shape_cast %39 : vector<1x1x4x32x8xbf16> to vector<4x32x8xbf16>
    %c0_32 = arith.constant 0 : index
    %c2 = arith.constant 2 : index
    %c0_33 = arith.constant 0 : index
    %c0_34 = arith.constant 0 : index
    %c0_35 = arith.constant 0 : index
    %41 = vector.load %arg6[%c0_32, %c2, %c0_33, %c0_34, %c0_35] : memref<1x6x4x32x8xbf16, #tpu.memory_space<vmem>>, vector<1x1x4x32x8xbf16>
    %42 = vector.shape_cast %41 : vector<1x1x4x32x8xbf16> to vector<4x32x8xbf16>
    %c0_36 = arith.constant 0 : index
    %c0_37 = arith.constant 0 : index
    %c0_38 = arith.constant 0 : index
    %c0_39 = arith.constant 0 : index
    %c0_40 = arith.constant 0 : index
    %43 = vector.load %arg7[%c0_36, %c0_37, %c0_38, %c0_39, %c0_40] : memref<1x2x4x8x32xbf16, #tpu.memory_space<vmem>>, vector<1x1x4x8x32xbf16>
    %44 = vector.shape_cast %43 : vector<1x1x4x8x32xbf16> to vector<4x8x32xbf16>
    %c0_41 = arith.constant 0 : index
    %c0_42 = arith.constant 0 : index
    %c0_43 = arith.constant 0 : index
    %c0_44 = arith.constant 0 : index
    %c0_45 = arith.constant 0 : index
    %45 = vector.load %arg8[%c0_41, %c0_42, %c0_43, %c0_44, %c0_45] : memref<1x6x4x1x8xf32, #tpu.memory_space<vmem>>, vector<1x1x4x1x8xf32>
    %46 = vector.shape_cast %45 : vector<1x1x4x1x8xf32> to vector<4x1x8xf32>
    %c0_46 = arith.constant 0 : index
    %c1_47 = arith.constant 1 : index
    %c0_48 = arith.constant 0 : index
    %c0_49 = arith.constant 0 : index
    %c0_50 = arith.constant 0 : index
    %47 = vector.load %arg8[%c0_46, %c1_47, %c0_48, %c0_49, %c0_50] : memref<1x6x4x1x8xf32, #tpu.memory_space<vmem>>, vector<1x1x4x1x8xf32>
    %48 = vector.shape_cast %47 : vector<1x1x4x1x8xf32> to vector<4x1x8xf32>
    %c0_51 = arith.constant 0 : index
    %c2_52 = arith.constant 2 : index
    %c0_53 = arith.constant 0 : index
    %c0_54 = arith.constant 0 : index
    %c0_55 = arith.constant 0 : index
    %49 = vector.load %arg8[%c0_51, %c2_52, %c0_53, %c0_54, %c0_55] : memref<1x6x4x1x8xf32, #tpu.memory_space<vmem>>, vector<1x1x4x1x8xf32>
    %50 = vector.shape_cast %49 : vector<1x1x4x1x8xf32> to vector<4x1x8xf32>
    %c0_56 = arith.constant 0 : index
    %c0_57 = arith.constant 0 : index
    %c0_58 = arith.constant 0 : index
    %c0_59 = arith.constant 0 : index
    %51 = vector.load %arg9[%c0_56, %c0_57, %c0_58, %c0_59] : memref<1x2x1x32xf32, #tpu.memory_space<vmem>>, vector<1x1x1x32xf32>
    %52 = vector.shape_cast %51 : vector<1x1x1x32xf32> to vector<1x32xf32>
    %53 = arith.truncf %36 : vector<8x32xf32> to vector<8x32xbf16>
    %54 = vector.shape_cast %53 : vector<8x32xbf16> to vector<1x8x32xbf16>
    %55 = vector.shape_cast %54 : vector<1x8x32xbf16> to vector<1x8x32xbf16>
    %56 = vector.broadcast %55 : vector<1x8x32xbf16> to vector<4x8x32xbf16>
    %57 = arith.truncf %36 : vector<8x32xf32> to vector<8x32xbf16>
    %58 = vector.shape_cast %57 : vector<8x32xbf16> to vector<1x8x32xbf16>
    %59 = vector.shape_cast %58 : vector<1x8x32xbf16> to vector<1x8x32xbf16>
    %60 = vector.broadcast %59 : vector<1x8x32xbf16> to vector<4x8x32xbf16>
    "tpu.trace_start"() <{level = 10 : i32, message = "htd,hdk->htk"}> : () -> ()
    %cst_60 = arith.constant dense<0.000000e+00> : vector<4x8x8xf32>
    %61 = tpu.matmul %56, %38, %cst_60 {dimension_numbers = #tpu.dot_dimension_numbers<[2], [1], [1], [2], [0, 0, 0, 1, 1, 2], [0], [0]>} : vector<4x8x32xbf16>, vector<4x32x8xbf16>, vector<4x8x8xf32> -> vector<4x8x8xf32>
    "tpu.trace_stop"() : () -> ()
    %62 = vector.broadcast %46 : vector<4x1x8xf32> to vector<4x8x8xf32>
    %63 = arith.addf %61, %62 : vector<4x8x8xf32>
    "tpu.trace_start"() <{level = 10 : i32, message = "hsd,hdk->hsk"}> : () -> ()
    %cst_61 = arith.constant dense<0.000000e+00> : vector<4x8x8xf32>
    %64 = tpu.matmul %60, %40, %cst_61 {dimension_numbers = #tpu.dot_dimension_numbers<[2], [1], [1], [2], [0, 0, 0, 1, 1, 2], [0], [0]>} : vector<4x8x32xbf16>, vector<4x32x8xbf16>, vector<4x8x8xf32> -> vector<4x8x8xf32>
    "tpu.trace_stop"() : () -> ()
    %65 = vector.broadcast %48 : vector<4x1x8xf32> to vector<4x8x8xf32>
    %66 = arith.addf %64, %65 : vector<4x8x8xf32>
    "tpu.trace_start"() <{level = 10 : i32, message = "hsd,hdk->hsk"}> : () -> ()
    %cst_62 = arith.constant dense<0.000000e+00> : vector<4x8x8xf32>
    %67 = tpu.matmul %60, %42, %cst_62 {dimension_numbers = #tpu.dot_dimension_numbers<[2], [1], [1], [2], [0, 0, 0, 1, 1, 2], [0], [0]>} : vector<4x8x32xbf16>, vector<4x32x8xbf16>, vector<4x8x8xf32> -> vector<4x8x8xf32>
    "tpu.trace_stop"() : () -> ()
    %68 = vector.broadcast %50 : vector<4x1x8xf32> to vector<4x8x8xf32>
    %69 = arith.addf %67, %68 : vector<4x8x8xf32>
    %70 = arith.truncf %63 : vector<4x8x8xf32> to vector<4x8x8xbf16>
    %71 = arith.truncf %66 : vector<4x8x8xf32> to vector<4x8x8xbf16>
    "tpu.trace_start"() <{level = 10 : i32, message = "htk,hsk->hts"}> : () -> ()
    %cst_63 = arith.constant dense<0.000000e+00> : vector<4x8x8xf32>
    %72 = tpu.matmul %70, %71, %cst_63 {dimension_numbers = #tpu.dot_dimension_numbers<[2], [2], [1], [1], [0, 0, 0, 1, 1, 1], [0], [0]>} : vector<4x8x8xbf16>, vector<4x8x8xbf16>, vector<4x8x8xf32> -> vector<4x8x8xf32>
    "tpu.trace_stop"() : () -> ()
    %cst_64 = arith.constant 0.353553385 : f32
    %73 = vector.broadcast %cst_64 : f32 to vector<4x8x8xf32>
    %74 = arith.mulf %72, %73 : vector<4x8x8xf32>
    %75 = vector.shape_cast %7 : vector<8x8xf32> to vector<1x8x8xf32>
    %cst_65 = arith.constant 0.000000e+00 : f32
    %76 = vector.broadcast %cst_65 : f32 to vector<1x8x8xf32>
    %77 = arith.cmpf ogt, %75, %76 : vector<1x8x8xf32>
    %cst_66 = arith.constant -1.000000e+09 : f32
    %78 = vector.shape_cast %77 : vector<1x8x8xi1> to vector<1x8x8xi1>
    %79 = vector.broadcast %78 : vector<1x8x8xi1> to vector<4x8x8xi1>
    %80 = vector.broadcast %cst_66 : f32 to vector<4x8x8xf32>
    %81 = arith.select %79, %74, %80 : vector<4x8x8xi1>, vector<4x8x8xf32>
    %cst_67 = arith.constant dense<0xFF800000> : vector<4x8xf32>
    %82 = vector.multi_reduction <maximumf>, %81, %cst_67 [2] : vector<4x8x8xf32> to vector<4x8xf32>
    %83 = vector.shape_cast %82 : vector<4x8xf32> to vector<4x8x1xf32>
    %84 = vector.broadcast %83 : vector<4x8x1xf32> to vector<4x8x8xf32>
    %85 = arith.subf %81, %84 : vector<4x8x8xf32>
    %86 = math.exp %85 : vector<4x8x8xf32>
    %cst_68 = arith.constant dense<0.000000e+00> : vector<4x8xf32>
    %87 = vector.multi_reduction <add>, %86, %cst_68 [2] : vector<4x8x8xf32> to vector<4x8xf32>
    %88 = vector.shape_cast %87 : vector<4x8xf32> to vector<4x8x1xf32>
    %89 = tpu.reciprocal %88 {approx = true} : vector<4x8x1xf32> -> vector<4x8x1xf32>
    %90 = vector.broadcast %89 : vector<4x8x1xf32> to vector<4x8x8xf32>
    %91 = arith.mulf %86, %90 : vector<4x8x8xf32>
    %92 = arith.truncf %91 : vector<4x8x8xf32> to vector<4x8x8xbf16>
    %93 = arith.truncf %69 : vector<4x8x8xf32> to vector<4x8x8xbf16>
    "tpu.trace_start"() <{level = 10 : i32, message = "hts,hsk->htk"}> : () -> ()
    %cst_69 = arith.constant dense<0.000000e+00> : vector<4x8x8xf32>
    %94 = tpu.matmul %92, %93, %cst_69 {dimension_numbers = #tpu.dot_dimension_numbers<[2], [1], [1], [2], [0, 0, 0, 1, 1, 2], [0], [0]>} : vector<4x8x8xbf16>, vector<4x8x8xbf16>, vector<4x8x8xf32> -> vector<4x8x8xf32>
    "tpu.trace_stop"() : () -> ()
    %95 = arith.truncf %94 : vector<4x8x8xf32> to vector<4x8x8xbf16>
    "tpu.trace_start"() <{level = 10 : i32, message = "htk,hkd->htd"}> : () -> ()
    %cst_70 = arith.constant dense<0.000000e+00> : vector<4x8x32xf32>
    %96 = tpu.matmul %95, %44, %cst_70 {dimension_numbers = #tpu.dot_dimension_numbers<[2], [1], [1], [2], [0, 0, 0, 1, 1, 2], [0], [0]>} : vector<4x8x8xbf16>, vector<4x8x32xbf16>, vector<4x8x32xf32> -> vector<4x8x32xf32>
    "tpu.trace_stop"() : () -> ()
    %cst_71 = arith.constant dense<0.000000e+00> : vector<8x32xf32>
    %97 = vector.multi_reduction <add>, %96, %cst_71 [0] : vector<4x8x32xf32> to vector<8x32xf32>
    %98 = vector.broadcast %52 : vector<1x32xf32> to vector<8x32xf32>
    %99 = arith.addf %97, %98 : vector<8x32xf32>
    %100 = arith.addf %3, %99 : vector<8x32xf32>
    %c0_72 = arith.constant 0 : index
    %c1_73 = arith.constant 1 : index
    %c0_74 = arith.constant 0 : index
    %c0_75 = arith.constant 0 : index
    %101 = vector.load %arg14[%c0_72, %c1_73, %c0_74, %c0_75] : memref<1x3x1x32xf32, #tpu.memory_space<vmem>>, vector<1x1x1x32xf32>
    %102 = vector.shape_cast %101 : vector<1x1x1x32xf32> to vector<1x32xf32>
    %c0_76 = arith.constant 0 : index
    %c1_77 = arith.constant 1 : index
    %c0_78 = arith.constant 0 : index
    %c0_79 = arith.constant 0 : index
    %103 = vector.load %arg15[%c0_76, %c1_77, %c0_78, %c0_79] : memref<1x3x1x32xf32, #tpu.memory_space<vmem>>, vector<1x1x1x32xf32>
    %104 = vector.shape_cast %103 : vector<1x1x1x32xf32> to vector<1x32xf32>
    %cst_80 = arith.constant dense<0.000000e+00> : vector<8xf32>
    %105 = vector.multi_reduction <add>, %100, %cst_80 [1] : vector<8x32xf32> to vector<8xf32>
    %106 = vector.shape_cast %105 : vector<8xf32> to vector<8x1xf32>
    %cst_81 = arith.constant 3.200000e+01 : f32
    %107 = vector.broadcast %cst_81 : f32 to vector<8x1xf32>
    %108 = arith.divf %106, %107 : vector<8x1xf32>
    %109 = vector.broadcast %108 : vector<8x1xf32> to vector<8x32xf32>
    %110 = arith.subf %100, %109 : vector<8x32xf32>
    %111 = arith.mulf %110, %110 : vector<8x32xf32>
    %cst_82 = arith.constant dense<0.000000e+00> : vector<8xf32>
    %112 = vector.multi_reduction <add>, %111, %cst_82 [1] : vector<8x32xf32> to vector<8xf32>
    %113 = vector.shape_cast %112 : vector<8xf32> to vector<8x1xf32>
    %cst_83 = arith.constant 0.0322580636 : f32
    %114 = vector.broadcast %cst_83 : f32 to vector<8x1xf32>
    %115 = arith.mulf %113, %114 : vector<8x1xf32>
    %116 = math.sqrt %115 : vector<8x1xf32>
    %cst_84 = arith.constant 9.99999997E-7 : f32
    %117 = vector.broadcast %cst_84 : f32 to vector<8x1xf32>
    %118 = arith.addf %116, %117 : vector<8x1xf32>
    %119 = tpu.reciprocal %118 {approx = true} : vector<8x1xf32> -> vector<8x1xf32>
    %120 = vector.broadcast %108 : vector<8x1xf32> to vector<8x32xf32>
    %121 = arith.subf %100, %120 : vector<8x32xf32>
    %122 = vector.broadcast %102 : vector<1x32xf32> to vector<8x32xf32>
    %123 = arith.mulf %122, %121 : vector<8x32xf32>
    %124 = vector.broadcast %119 : vector<8x1xf32> to vector<8x32xf32>
    %125 = arith.mulf %123, %124 : vector<8x32xf32>
    %126 = vector.broadcast %104 : vector<1x32xf32> to vector<8x32xf32>
    %127 = arith.addf %125, %126 : vector<8x32xf32>
    %c0_85 = arith.constant 0 : index
    %c3 = arith.constant 3 : index
    %c0_86 = arith.constant 0 : index
    %c0_87 = arith.constant 0 : index
    %c0_88 = arith.constant 0 : index
    %128 = vector.load %arg6[%c0_85, %c3, %c0_86, %c0_87, %c0_88] : memref<1x6x4x32x8xbf16, #tpu.memory_space<vmem>>, vector<1x1x4x32x8xbf16>
    %129 = vector.shape_cast %128 : vector<1x1x4x32x8xbf16> to vector<4x32x8xbf16>
    %c0_89 = arith.constant 0 : index
    %c4 = arith.constant 4 : index
    %c0_90 = arith.constant 0 : index
    %c0_91 = arith.constant 0 : index
    %c0_92 = arith.constant 0 : index
    %130 = vector.load %arg6[%c0_89, %c4, %c0_90, %c0_91, %c0_92] : memref<1x6x4x32x8xbf16, #tpu.memory_space<vmem>>, vector<1x1x4x32x8xbf16>
    %131 = vector.shape_cast %130 : vector<1x1x4x32x8xbf16> to vector<4x32x8xbf16>
    %c0_93 = arith.constant 0 : index
    %c5 = arith.constant 5 : index
    %c0_94 = arith.constant 0 : index
    %c0_95 = arith.constant 0 : index
    %c0_96 = arith.constant 0 : index
    %132 = vector.load %arg6[%c0_93, %c5, %c0_94, %c0_95, %c0_96] : memref<1x6x4x32x8xbf16, #tpu.memory_space<vmem>>, vector<1x1x4x32x8xbf16>
    %133 = vector.shape_cast %132 : vector<1x1x4x32x8xbf16> to vector<4x32x8xbf16>
    %c0_97 = arith.constant 0 : index
    %c1_98 = arith.constant 1 : index
    %c0_99 = arith.constant 0 : index
    %c0_100 = arith.constant 0 : index
    %c0_101 = arith.constant 0 : index
    %134 = vector.load %arg7[%c0_97, %c1_98, %c0_99, %c0_100, %c0_101] : memref<1x2x4x8x32xbf16, #tpu.memory_space<vmem>>, vector<1x1x4x8x32xbf16>
    %135 = vector.shape_cast %134 : vector<1x1x4x8x32xbf16> to vector<4x8x32xbf16>
    %c0_102 = arith.constant 0 : index
    %c3_103 = arith.constant 3 : index
    %c0_104 = arith.constant 0 : index
    %c0_105 = arith.constant 0 : index
    %c0_106 = arith.constant 0 : index
    %136 = vector.load %arg8[%c0_102, %c3_103, %c0_104, %c0_105, %c0_106] : memref<1x6x4x1x8xf32, #tpu.memory_space<vmem>>, vector<1x1x4x1x8xf32>
    %137 = vector.shape_cast %136 : vector<1x1x4x1x8xf32> to vector<4x1x8xf32>
    %c0_107 = arith.constant 0 : index
    %c4_108 = arith.constant 4 : index
    %c0_109 = arith.constant 0 : index
    %c0_110 = arith.constant 0 : index
    %c0_111 = arith.constant 0 : index
    %138 = vector.load %arg8[%c0_107, %c4_108, %c0_109, %c0_110, %c0_111] : memref<1x6x4x1x8xf32, #tpu.memory_space<vmem>>, vector<1x1x4x1x8xf32>
    %139 = vector.shape_cast %138 : vector<1x1x4x1x8xf32> to vector<4x1x8xf32>
    %c0_112 = arith.constant 0 : index
    %c5_113 = arith.constant 5 : index
    %c0_114 = arith.constant 0 : index
    %c0_115 = arith.constant 0 : index
    %c0_116 = arith.constant 0 : index
    %140 = vector.load %arg8[%c0_112, %c5_113, %c0_114, %c0_115, %c0_116] : memref<1x6x4x1x8xf32, #tpu.memory_space<vmem>>, vector<1x1x4x1x8xf32>
    %141 = vector.shape_cast %140 : vector<1x1x4x1x8xf32> to vector<4x1x8xf32>
    %c0_117 = arith.constant 0 : index
    %c1_118 = arith.constant 1 : index
    %c0_119 = arith.constant 0 : index
    %c0_120 = arith.constant 0 : index
    %142 = vector.load %arg9[%c0_117, %c1_118, %c0_119, %c0_120] : memref<1x2x1x32xf32, #tpu.memory_space<vmem>>, vector<1x1x1x32xf32>
    %143 = vector.shape_cast %142 : vector<1x1x1x32xf32> to vector<1x32xf32>
    %144 = arith.truncf %127 : vector<8x32xf32> to vector<8x32xbf16>
    %145 = vector.shape_cast %144 : vector<8x32xbf16> to vector<1x8x32xbf16>
    %146 = vector.shape_cast %145 : vector<1x8x32xbf16> to vector<1x8x32xbf16>
    %147 = vector.broadcast %146 : vector<1x8x32xbf16> to vector<4x8x32xbf16>
    %148 = arith.truncf %5 : vector<8x32xf32> to vector<8x32xbf16>
    %149 = vector.shape_cast %148 : vector<8x32xbf16> to vector<1x8x32xbf16>
    %150 = vector.shape_cast %149 : vector<1x8x32xbf16> to vector<1x8x32xbf16>
    %151 = vector.broadcast %150 : vector<1x8x32xbf16> to vector<4x8x32xbf16>
    "tpu.trace_start"() <{level = 10 : i32, message = "htd,hdk->htk"}> : () -> ()
    %cst_121 = arith.constant dense<0.000000e+00> : vector<4x8x8xf32>
    %152 = tpu.matmul %147, %129, %cst_121 {dimension_numbers = #tpu.dot_dimension_numbers<[2], [1], [1], [2], [0, 0, 0, 1, 1, 2], [0], [0]>} : vector<4x8x32xbf16>, vector<4x32x8xbf16>, vector<4x8x8xf32> -> vector<4x8x8xf32>
    "tpu.trace_stop"() : () -> ()
    %153 = vector.broadcast %137 : vector<4x1x8xf32> to vector<4x8x8xf32>
    %154 = arith.addf %152, %153 : vector<4x8x8xf32>
    "tpu.trace_start"() <{level = 10 : i32, message = "hsd,hdk->hsk"}> : () -> ()
    %cst_122 = arith.constant dense<0.000000e+00> : vector<4x8x8xf32>
    %155 = tpu.matmul %151, %131, %cst_122 {dimension_numbers = #tpu.dot_dimension_numbers<[2], [1], [1], [2], [0, 0, 0, 1, 1, 2], [0], [0]>} : vector<4x8x32xbf16>, vector<4x32x8xbf16>, vector<4x8x8xf32> -> vector<4x8x8xf32>
    "tpu.trace_stop"() : () -> ()
    %156 = vector.broadcast %139 : vector<4x1x8xf32> to vector<4x8x8xf32>
    %157 = arith.addf %155, %156 : vector<4x8x8xf32>
    "tpu.trace_start"() <{level = 10 : i32, message = "hsd,hdk->hsk"}> : () -> ()
    %cst_123 = arith.constant dense<0.000000e+00> : vector<4x8x8xf32>
    %158 = tpu.matmul %151, %133, %cst_123 {dimension_numbers = #tpu.dot_dimension_numbers<[2], [1], [1], [2], [0, 0, 0, 1, 1, 2], [0], [0]>} : vector<4x8x32xbf16>, vector<4x32x8xbf16>, vector<4x8x8xf32> -> vector<4x8x8xf32>
    "tpu.trace_stop"() : () -> ()
    %159 = vector.broadcast %141 : vector<4x1x8xf32> to vector<4x8x8xf32>
    %160 = arith.addf %158, %159 : vector<4x8x8xf32>
    %161 = arith.truncf %154 : vector<4x8x8xf32> to vector<4x8x8xbf16>
    %162 = arith.truncf %157 : vector<4x8x8xf32> to vector<4x8x8xbf16>
    "tpu.trace_start"() <{level = 10 : i32, message = "htk,hsk->hts"}> : () -> ()
    %cst_124 = arith.constant dense<0.000000e+00> : vector<4x8x8xf32>
    %163 = tpu.matmul %161, %162, %cst_124 {dimension_numbers = #tpu.dot_dimension_numbers<[2], [2], [1], [1], [0, 0, 0, 1, 1, 1], [0], [0]>} : vector<4x8x8xbf16>, vector<4x8x8xbf16>, vector<4x8x8xf32> -> vector<4x8x8xf32>
    "tpu.trace_stop"() : () -> ()
    %cst_125 = arith.constant 0.353553385 : f32
    %164 = vector.broadcast %cst_125 : f32 to vector<4x8x8xf32>
    %165 = arith.mulf %163, %164 : vector<4x8x8xf32>
    %166 = vector.shape_cast %9 : vector<1x8xf32> to vector<1x1x8xf32>
    %cst_126 = arith.constant 0.000000e+00 : f32
    %167 = vector.broadcast %cst_126 : f32 to vector<1x1x8xf32>
    %168 = arith.cmpf ogt, %166, %167 : vector<1x1x8xf32>
    %cst_127 = arith.constant -1.000000e+09 : f32
    %169 = vector.shape_cast %168 : vector<1x1x8xi1> to vector<1x1x8xi1>
    %170 = vector.broadcast %169 : vector<1x1x8xi1> to vector<4x8x8xi1>
    %171 = vector.broadcast %cst_127 : f32 to vector<4x8x8xf32>
    %172 = arith.select %170, %165, %171 : vector<4x8x8xi1>, vector<4x8x8xf32>
    %cst_128 = arith.constant dense<0xFF800000> : vector<4x8xf32>
    %173 = vector.multi_reduction <maximumf>, %172, %cst_128 [2] : vector<4x8x8xf32> to vector<4x8xf32>
    %174 = vector.shape_cast %173 : vector<4x8xf32> to vector<4x8x1xf32>
    %175 = vector.broadcast %174 : vector<4x8x1xf32> to vector<4x8x8xf32>
    %176 = arith.subf %172, %175 : vector<4x8x8xf32>
    %177 = math.exp %176 : vector<4x8x8xf32>
    %cst_129 = arith.constant dense<0.000000e+00> : vector<4x8xf32>
    %178 = vector.multi_reduction <add>, %177, %cst_129 [2] : vector<4x8x8xf32> to vector<4x8xf32>
    %179 = vector.shape_cast %178 : vector<4x8xf32> to vector<4x8x1xf32>
    %180 = tpu.reciprocal %179 {approx = true} : vector<4x8x1xf32> -> vector<4x8x1xf32>
    %181 = vector.broadcast %180 : vector<4x8x1xf32> to vector<4x8x8xf32>
    %182 = arith.mulf %177, %181 : vector<4x8x8xf32>
    %183 = arith.truncf %182 : vector<4x8x8xf32> to vector<4x8x8xbf16>
    %184 = arith.truncf %160 : vector<4x8x8xf32> to vector<4x8x8xbf16>
    "tpu.trace_start"() <{level = 10 : i32, message = "hts,hsk->htk"}> : () -> ()
    %cst_130 = arith.constant dense<0.000000e+00> : vector<4x8x8xf32>
    %185 = tpu.matmul %183, %184, %cst_130 {dimension_numbers = #tpu.dot_dimension_numbers<[2], [1], [1], [2], [0, 0, 0, 1, 1, 2], [0], [0]>} : vector<4x8x8xbf16>, vector<4x8x8xbf16>, vector<4x8x8xf32> -> vector<4x8x8xf32>
    "tpu.trace_stop"() : () -> ()
    %186 = arith.truncf %185 : vector<4x8x8xf32> to vector<4x8x8xbf16>
    "tpu.trace_start"() <{level = 10 : i32, message = "htk,hkd->htd"}> : () -> ()
    %cst_131 = arith.constant dense<0.000000e+00> : vector<4x8x32xf32>
    %187 = tpu.matmul %186, %135, %cst_131 {dimension_numbers = #tpu.dot_dimension_numbers<[2], [1], [1], [2], [0, 0, 0, 1, 1, 2], [0], [0]>} : vector<4x8x8xbf16>, vector<4x8x32xbf16>, vector<4x8x32xf32> -> vector<4x8x32xf32>
    "tpu.trace_stop"() : () -> ()
    %cst_132 = arith.constant dense<0.000000e+00> : vector<8x32xf32>
    %188 = vector.multi_reduction <add>, %187, %cst_132 [0] : vector<4x8x32xf32> to vector<8x32xf32>
    %189 = vector.broadcast %143 : vector<1x32xf32> to vector<8x32xf32>
    %190 = arith.addf %188, %189 : vector<8x32xf32>
    %191 = arith.addf %100, %190 : vector<8x32xf32>
    %c0_133 = arith.constant 0 : index
    %c2_134 = arith.constant 2 : index
    %c0_135 = arith.constant 0 : index
    %c0_136 = arith.constant 0 : index
    %192 = vector.load %arg14[%c0_133, %c2_134, %c0_135, %c0_136] : memref<1x3x1x32xf32, #tpu.memory_space<vmem>>, vector<1x1x1x32xf32>
    %193 = vector.shape_cast %192 : vector<1x1x1x32xf32> to vector<1x32xf32>
    %c0_137 = arith.constant 0 : index
    %c2_138 = arith.constant 2 : index
    %c0_139 = arith.constant 0 : index
    %c0_140 = arith.constant 0 : index
    %194 = vector.load %arg15[%c0_137, %c2_138, %c0_139, %c0_140] : memref<1x3x1x32xf32, #tpu.memory_space<vmem>>, vector<1x1x1x32xf32>
    %195 = vector.shape_cast %194 : vector<1x1x1x32xf32> to vector<1x32xf32>
    %cst_141 = arith.constant dense<0.000000e+00> : vector<8xf32>
    %196 = vector.multi_reduction <add>, %191, %cst_141 [1] : vector<8x32xf32> to vector<8xf32>
    %197 = vector.shape_cast %196 : vector<8xf32> to vector<8x1xf32>
    %cst_142 = arith.constant 3.200000e+01 : f32
    %198 = vector.broadcast %cst_142 : f32 to vector<8x1xf32>
    %199 = arith.divf %197, %198 : vector<8x1xf32>
    %200 = vector.broadcast %199 : vector<8x1xf32> to vector<8x32xf32>
    %201 = arith.subf %191, %200 : vector<8x32xf32>
    %202 = arith.mulf %201, %201 : vector<8x32xf32>
    %cst_143 = arith.constant dense<0.000000e+00> : vector<8xf32>
    %203 = vector.multi_reduction <add>, %202, %cst_143 [1] : vector<8x32xf32> to vector<8xf32>
    %204 = vector.shape_cast %203 : vector<8xf32> to vector<8x1xf32>
    %cst_144 = arith.constant 0.0322580636 : f32
    %205 = vector.broadcast %cst_144 : f32 to vector<8x1xf32>
    %206 = arith.mulf %204, %205 : vector<8x1xf32>
    %207 = math.sqrt %206 : vector<8x1xf32>
    %cst_145 = arith.constant 9.99999997E-7 : f32
    %208 = vector.broadcast %cst_145 : f32 to vector<8x1xf32>
    %209 = arith.addf %207, %208 : vector<8x1xf32>
    %210 = tpu.reciprocal %209 {approx = true} : vector<8x1xf32> -> vector<8x1xf32>
    %211 = vector.broadcast %199 : vector<8x1xf32> to vector<8x32xf32>
    %212 = arith.subf %191, %211 : vector<8x32xf32>
    %213 = vector.broadcast %193 : vector<1x32xf32> to vector<8x32xf32>
    %214 = arith.mulf %213, %212 : vector<8x32xf32>
    %215 = vector.broadcast %210 : vector<8x1xf32> to vector<8x32xf32>
    %216 = arith.mulf %214, %215 : vector<8x32xf32>
    %217 = vector.broadcast %195 : vector<1x32xf32> to vector<8x32xf32>
    %218 = arith.addf %216, %217 : vector<8x32xf32>
    %219 = arith.truncf %218 : vector<8x32xf32> to vector<8x32xbf16>
    %c0_146 = arith.constant 0 : index
    %c0_147 = arith.constant 0 : index
    %c0_148 = arith.constant 0 : index
    %220 = vector.load %arg10[%c0_146, %c0_147, %c0_148] : memref<1x32x64xbf16, #tpu.memory_space<vmem>>, vector<1x32x64xbf16>
    %221 = vector.shape_cast %220 : vector<1x32x64xbf16> to vector<32x64xbf16>
    %cst_149 = arith.constant dense<0.000000e+00> : vector<8x64xf32>
    %222 = tpu.matmul %219, %221, %cst_149 {dimension_numbers = #tpu.dot_dimension_numbers<[1], [0], [0], [1], [0, 0, 1, 1], [], []>} : vector<8x32xbf16>, vector<32x64xbf16>, vector<8x64xf32> -> vector<8x64xf32>
    %c0_150 = arith.constant 0 : index
    %c0_151 = arith.constant 0 : index
    %c0_152 = arith.constant 0 : index
    %223 = vector.load %arg11[%c0_150, %c0_151, %c0_152] : memref<1x1x64xf32, #tpu.memory_space<vmem>>, vector<1x1x64xf32>
    %224 = vector.shape_cast %223 : vector<1x1x64xf32> to vector<1x64xf32>
    %225 = vector.broadcast %224 : vector<1x64xf32> to vector<8x64xf32>
    %226 = arith.addf %222, %225 : vector<8x64xf32>
    %cst_153 = arith.constant 0.000000e+00 : f32
    %227 = vector.broadcast %cst_153 : f32 to vector<8x64xf32>
    %228 = arith.maximumf %226, %227 : vector<8x64xf32>
    %229 = arith.truncf %228 : vector<8x64xf32> to vector<8x64xbf16>
    %c0_154 = arith.constant 0 : index
    %c0_155 = arith.constant 0 : index
    %c0_156 = arith.constant 0 : index
    %230 = vector.load %arg12[%c0_154, %c0_155, %c0_156] : memref<1x64x32xbf16, #tpu.memory_space<vmem>>, vector<1x64x32xbf16>
    %231 = vector.shape_cast %230 : vector<1x64x32xbf16> to vector<64x32xbf16>
    %cst_157 = arith.constant dense<0.000000e+00> : vector<8x32xf32>
    %232 = tpu.matmul %229, %231, %cst_157 {dimension_numbers = #tpu.dot_dimension_numbers<[1], [0], [0], [1], [0, 0, 1, 1], [], []>} : vector<8x64xbf16>, vector<64x32xbf16>, vector<8x32xf32> -> vector<8x32xf32>
    %233 = arith.addf %191, %232 : vector<8x32xf32>
    %c0_158 = arith.constant 0 : index
    %c0_159 = arith.constant 0 : index
    %c0_160 = arith.constant 0 : index
    %234 = vector.load %arg13[%c0_158, %c0_159, %c0_160] : memref<1x1x32xf32, #tpu.memory_space<vmem>>, vector<1x1x32xf32>
    %235 = vector.shape_cast %234 : vector<1x1x32xf32> to vector<1x32xf32>
    %236 = vector.broadcast %235 : vector<1x32xf32> to vector<8x32xf32>
    %237 = arith.addf %233, %236 : vector<8x32xf32>
    %c0_161 = arith.constant 0 : index
    %c0_162 = arith.constant 0 : index
    %238 = vector.load %arg19[%c0_161, %c0_162] : memref<8x32xf32, #tpu.memory_space<vmem>>, vector<8x32xf32>
    tpu.vector_store %arg19[%c0_161, %c0_162], %237 {strides = array<i32>} : memref<8x32xf32, #tpu.memory_space<vmem>>, vector<8x32xf32>,
    %c1_i32 = arith.constant 1 : i32
    %239 = arith.cmpi eq, %arg1, %c1_i32 : i32
    %240 = arith.extui %239 : i1 to i32
    %c0_i32_163 = arith.constant 0 : i32
    %241 = arith.cmpi ne, %240, %c0_i32_163 : i32
    scf.if %241 {
      %c0_164 = arith.constant 0 : index
      %c0_165 = arith.constant 0 : index
      %242 = vector.load %arg16[%c0_164, %c0_165] : memref<1x32xf32, #tpu.memory_space<vmem>>, vector<1x32xf32>
      %c0_166 = arith.constant 0 : index
      %c0_167 = arith.constant 0 : index
      %243 = vector.load %arg17[%c0_166, %c0_167] : memref<1x32xf32, #tpu.memory_space<vmem>>, vector<1x32xf32>
      %cst_168 = arith.constant dense<0.000000e+00> : vector<8xf32>
      %244 = vector.multi_reduction <add>, %237, %cst_168 [1] : vector<8x32xf32> to vector<8xf32>
      %245 = vector.shape_cast %244 : vector<8xf32> to vector<8x1xf32>
      %cst_169 = arith.constant 3.200000e+01 : f32
      %246 = vector.broadcast %cst_169 : f32 to vector<8x1xf32>
      %247 = arith.divf %245, %246 : vector<8x1xf32>
      %248 = vector.broadcast %247 : vector<8x1xf32> to vector<8x32xf32>
      %249 = arith.subf %237, %248 : vector<8x32xf32>
      %250 = arith.mulf %249, %249 : vector<8x32xf32>
      %cst_170 = arith.constant dense<0.000000e+00> : vector<8xf32>
      %251 = vector.multi_reduction <add>, %250, %cst_170 [1] : vector<8x32xf32> to vector<8xf32>
      %252 = vector.shape_cast %251 : vector<8xf32> to vector<8x1xf32>
      %cst_171 = arith.constant 0.0322580636 : f32
      %253 = vector.broadcast %cst_171 : f32 to vector<8x1xf32>
      %254 = arith.mulf %252, %253 : vector<8x1xf32>
      %255 = math.sqrt %254 : vector<8x1xf32>
      %cst_172 = arith.constant 9.99999997E-7 : f32
      %256 = vector.broadcast %cst_172 : f32 to vector<8x1xf32>
      %257 = arith.addf %255, %256 : vector<8x1xf32>
      %258 = tpu.reciprocal %257 {approx = true} : vector<8x1xf32> -> vector<8x1xf32>
      %259 = vector.broadcast %247 : vector<8x1xf32> to vector<8x32xf32>
      %260 = arith.subf %237, %259 : vector<8x32xf32>
      %261 = vector.broadcast %242 : vector<1x32xf32> to vector<8x32xf32>
      %262 = arith.mulf %261, %260 : vector<8x32xf32>
      %263 = vector.broadcast %258 : vector<8x1xf32> to vector<8x32xf32>
      %264 = arith.mulf %262, %263 : vector<8x32xf32>
      %265 = vector.broadcast %243 : vector<1x32xf32> to vector<8x32xf32>
      %266 = arith.addf %264, %265 : vector<8x32xf32>
      %c0_173 = arith.constant 0 : index
      %c0_174 = arith.constant 0 : index
      %c0_175 = arith.constant 0 : index
      %267 = vector.load %arg18[%c0_173, %c0_174, %c0_175] : memref<1x8x32xf32, #tpu.memory_space<vmem>>, vector<1x8x32xf32>
      %268 = vector.shape_cast %267 : vector<1x8x32xf32> to vector<8x32xf32>
      %269 = vector.shape_cast %266 : vector<8x32xf32> to vector<1x8x32xf32>
      tpu.vector_store %arg18[%c0_173, %c0_174, %c0_175], %269 {strides = array<i32>} : memref<1x8x32xf32, #tpu.memory_space<vmem>>, vector<1x8x32xf32>,
    } else {
    }
    return
  }
  func.func @transform_0(%arg0: i32, %arg1: i32) -> (i32, i32, i32) {
    %c0_i32 = arith.constant 0 : i32
    %c0_i32_0 = arith.constant 0 : i32
    %c0_i32_1 = arith.constant 0 : i32
    return %arg0, %c0_i32, %c0_i32_0 : i32, i32, i32
  }
  func.func @transform_1(%arg0: i32, %arg1: i32) -> (i32, i32, i32) {
    %c0_i32 = arith.constant 0 : i32
    %c0_i32_0 = arith.constant 0 : i32
    %c0_i32_1 = arith.constant 0 : i32
    return %arg0, %c0_i32, %c0_i32_0 : i32, i32, i32
  }
  func.func @transform_2(%arg0: i32, %arg1: i32) -> (i32, i32, i32) {
    %c0_i32 = arith.constant 0 : i32
    %c0_i32_0 = arith.constant 0 : i32
    %c0_i32_1 = arith.constant 0 : i32
    return %arg0, %c0_i32, %c0_i32_0 : i32, i32, i32
  }
  func.func @transform_3(%arg0: i32, %arg1: i32) -> (i32, i32, i32) {
    %c0_i32 = arith.constant 0 : i32
    %c0_i32_0 = arith.constant 0 : i32
    %c0_i32_1 = arith.constant 0 : i32
    return %arg0, %c0_i32, %c0_i32_0 : i32, i32, i32
  }
  func.func @transform_4(%arg0: i32, %arg1: i32) -> (i32, i32, i32, i32, i32) {
    %c0_i32 = arith.constant 0 : i32
    %c0_i32_0 = arith.constant 0 : i32
    %c0_i32_1 = arith.constant 0 : i32
    %c0_i32_2 = arith.constant 0 : i32
    %c0_i32_3 = arith.constant 0 : i32
    return %arg1, %c0_i32, %c0_i32_0, %c0_i32_1, %c0_i32_2 : i32, i32, i32, i32, i32
  }
  func.func @transform_5(%arg0: i32, %arg1: i32) -> (i32, i32, i32, i32, i32) {
    %c0_i32 = arith.constant 0 : i32
    %c0_i32_0 = arith.constant 0 : i32
    %c0_i32_1 = arith.constant 0 : i32
    %c0_i32_2 = arith.constant 0 : i32
    %c0_i32_3 = arith.constant 0 : i32
    return %arg1, %c0_i32, %c0_i32_0, %c0_i32_1, %c0_i32_2 : i32, i32, i32, i32, i32
  }
  func.func @transform_6(%arg0: i32, %arg1: i32) -> (i32, i32, i32, i32, i32) {
    %c0_i32 = arith.constant 0 : i32
    %c0_i32_0 = arith.constant 0 : i32
    %c0_i32_1 = arith.constant 0 : i32
    %c0_i32_2 = arith.constant 0 : i32
    %c0_i32_3 = arith.constant 0 : i32
    return %arg1, %c0_i32, %c0_i32_0, %c0_i32_1, %c0_i32_2 : i32, i32, i32, i32, i32
  }
  func.func @transform_7(%arg0: i32, %arg1: i32) -> (i32, i32, i32, i32) {
    %c0_i32 = arith.constant 0 : i32
    %c0_i32_0 = arith.constant 0 : i32
    %c0_i32_1 = arith.constant 0 : i32
    %c0_i32_2 = arith.constant 0 : i32
    return %arg1, %c0_i32, %c0_i32_0, %c0_i32_1 : i32, i32, i32, i32
  }
  func.func @transform_8(%arg0: i32, %arg1: i32) -> (i32, i32, i32) {
    %c0_i32 = arith.constant 0 : i32
    %c0_i32_0 = arith.constant 0 : i32
    %c0_i32_1 = arith.constant 0 : i32
    return %arg1, %c0_i32, %c0_i32_0 : i32, i32, i32
  }
  func.func @transform_9(%arg0: i32, %arg1: i32) -> (i32, i32, i32) {
    %c0_i32 = arith.constant 0 : i32
    %c0_i32_0 = arith.constant 0 : i32
    %c0_i32_1 = arith.constant 0 : i32
    return %arg1, %c0_i32, %c0_i32_0 : i32, i32, i32
  }
  func.func @transform_10(%arg0: i32, %arg1: i32) -> (i32, i32, i32) {
    %c0_i32 = arith.constant 0 : i32
    %c0_i32_0 = arith.constant 0 : i32
    %c0_i32_1 = arith.constant 0 : i32
    return %arg1, %c0_i32, %c0_i32_0 : i32, i32, i32
  }
  func.func @transform_11(%arg0: i32, %arg1: i32) -> (i32, i32, i32) {
    %c0_i32 = arith.constant 0 : i32
    %c0_i32_0 = arith.constant 0 : i32
    %c0_i32_1 = arith.constant 0 : i32
    return %arg1, %c0_i32, %c0_i32_0 : i32, i32, i32
  }
  func.func @transform_12(%arg0: i32, %arg1: i32) -> (i32, i32, i32, i32) {
    %c0_i32 = arith.constant 0 : i32
    %c0_i32_0 = arith.constant 0 : i32
    %c0_i32_1 = arith.constant 0 : i32
    %c0_i32_2 = arith.constant 0 : i32
    return %arg1, %c0_i32, %c0_i32_0, %c0_i32_1 : i32, i32, i32, i32
  }
  func.func @transform_13(%arg0: i32, %arg1: i32) -> (i32, i32, i32, i32) {
    %c0_i32 = arith.constant 0 : i32
    %c0_i32_0 = arith.constant 0 : i32
    %c0_i32_1 = arith.constant 0 : i32
    %c0_i32_2 = arith.constant 0 : i32
    return %arg1, %c0_i32, %c0_i32_0, %c0_i32_1 : i32, i32, i32, i32
  }
  func.func @transform_14(%arg0: i32, %arg1: i32) -> (i32, i32) {
    %c0_i32 = arith.constant 0 : i32
    %c0_i32_0 = arith.constant 0 : i32
    %c0_i32_1 = arith.constant 0 : i32
    return %c0_i32, %c0_i32_0 : i32, i32
  }
  func.func @transform_15(%arg0: i32, %arg1: i32) -> (i32, i32) {
    %c0_i32 = arith.constant 0 : i32
    %c0_i32_0 = arith.constant 0 : i32
    %c0_i32_1 = arith.constant 0 : i32
    return %c0_i32, %c0_i32_0 : i32, i32
  }
  func.func @transform_16(%arg0: i32, %arg1: i32) -> (i32, i32, i32) {
    %c0_i32 = arith.constant 0 : i32
    %c0_i32_0 = arith.constant 0 : i32
    %c0_i32_1 = arith.constant 0 : i32
    return %arg0, %c0_i32, %c0_i32_0 : i32, i32, i32
  }
}

</mosaic_0001>

<bundles_post_ra>
// kernel: tpu_custom_call.1
= control target key start
LH: loop header
LB: loop body
LE: loop exit
PB: predicated region body
PF: predicated region fallthrough
CT: control target
= control target key end

     0   :  { %s5921_s0 = inlined_call_operand.vmem [shape: f32[2,8,32], index: 0, kind: input, shape index: {}]   ;;  %s5922_s1 = inlined_call_operand.vmem [shape: f32[2,8,32], index: 1, kind: input, shape index: {}]   ;;  %s5923_s2 = inlined_call_operand.vmem [shape: f32[2,8,8], index: 2, kind: input, shape index: {}]   ;;  %s5924_s3 = inlined_call_operand.vmem [shape: f32[2,1,8], index: 3, kind: input, shape index: {}]   ;;  %s5925_s4 = inlined_call_operand.vmem [shape: bf16[2,6,4,32,8], index: 4, kind: input, shape index: {}]   ;;  %s5926_s5 = inlined_call_operand.vmem [shape: bf16[2,2,4,8,32], index: 5, kind: input, shape index: {}]   ;;  %s5927_s6 = inlined_call_operand.vmem [shape: f32[2,6,4,1,8], index: 6, kind: input, shape index: {}]   ;;  %s5928_s7 = inlined_call_operand.vmem [shape: f32[2,2,1,32], index: 7, kind: input, shape index: {}]   ;;  %s5929_s8 = inlined_call_operand.vmem [shape: bf16[2,32,64], index: 8, kind: input, shape index: {}]   ;;  %s5930_s9 = inlined_call_operand.vmem [shape: f32[2,1,64], index: 9, kind: input, shape index: {}]   ;;  %s5931_s10 = inlined_call_operand.vmem [shape: bf16[2,64,32], index: 10, kind: input, shape index: {}]   ;;  %s5932_s11 = inlined_call_operand.vmem [shape: f32[2,1,32], index: 11, kind: input, shape index: {}]   ;;  %s5933_s12 = inlined_call_operand.vmem [shape: f32[2,3,1,32], index: 12, kind: input, shape index: {}]   ;;  %s5934_s13 = inlined_call_operand.vmem [shape: f32[2,3,1,32], index: 13, kind: input, shape index: {}]   ;;  %s5935_s14 = inlined_call_operand.vmem [shape: f32[1,32], index: 14, kind: input, shape index: {}]   ;;  %s5936_s15 = inlined_call_operand.vmem [shape: f32[1,32], index: 15, kind: input, shape index: {}]   ;;  %s5937_s16 = inlined_call_operand.hbm [shape: f32[2,8,32], index: 16, kind: output, shape index: {}]  }
   0x1   :  { %5954 = sst [smem:[#allocation20_spill]] %s5921_s0 }
   0x2   :  { %5955 = sst [smem:[#allocation21_spill]] %s5922_s1 }
   0x3   :  { %5956 = sst [smem:[#allocation22_spill]] %s5924_s3 }
   0x4   :  { %5957 = sst [smem:[#allocation23_spill]] %s5925_s4 }
   0x5   :  { %5958 = sst [smem:[#allocation24_spill]] %s5926_s5 }
   0x6   :  { %5959 = sst [smem:[#allocation25_spill]] %s5927_s6 }
   0x7   :  { %5960 = sst [smem:[#allocation26_spill]] %s5928_s7 }
   0x8   :  { %5961 = sst [smem:[#allocation27_spill]] %s5929_s8 }
   0x9   :  { %5962 = sst [smem:[#allocation28_spill]] %s5934_s13 }
   0xa   :  { %5963 = sst [smem:[#allocation29_spill]] %s5935_s14 }
   0xb   :  { %5964 = sst [smem:[#allocation30_spill]] %s5936_s15 }
   0xc   :  { %5965 = sst [smem:[#allocation31_spill]] %s5937_s16 }
   0xd   :  { %21 = vsyncpa [#allocation4], 0 }
   0xe   :  { %23 = vsyncpa [#allocation4 + $0x1], 0  ;;  %s5264_s21 = smov 0   ;;  %s5266_s22 = smov 0  }
   0xf   :  { %s5268_s23 = smov 0   ;;  %s5270_s24 = smov 0  }
  0x10   :  { %s5272_s25 = smov 0   ;;  %s5274_s26 = smov 0  }
  0x11   :  { %s5276_s27 = smov 0   ;;  %s5278_s28 = smov 0  }
  0x12 LB: > { %5966 = sst [smem:[#allocation6_spill]] %s5145_s21  ;;  %s4142_s29 = sadd.s32 4294967295, %s5173_s28   ;;  %s5173_s28 = sphi %s5278_s28, %s29_s28   ;;  %s5169_s27 = sphi %s5276_s27, %s6017_s27   ;;  %s5165_s26 = sphi %s5274_s26, %s6016_s26   ;;  %s5161_s25 = sphi %s5272_s25, %s6015_s25   ;;  %s5157_s24 = sphi %s5270_s24, %s6014_s24   ;;  %s5153_s23 = sphi %s5268_s23, %s6013_s23   ;;  %s5149_s22 = sphi %s5266_s22, %s6012_s22   ;;  %s5145_s21 = sphi %s5264_s21, %s6011_s21  }
  0x13   : > { %5967 = sst [smem:[#allocation7_spill]] %s5149_s22  ;;  %s4143_s30 = sadd.s32 4294967294, %s5173_s28  }
  0x14   : > { %5968 = sst [smem:[#allocation8_spill]] %s5153_s23  ;;  %s38_s0 = sadd.s32 1, %s5165_s26 }
  0x15   : > { %5969 = sst [smem:[#allocation9_spill]] %s5157_s24  ;;  %p39_p0 = scmp.ge.s32.totalorder %s38_s0, 2 }
  0x16   : > { %5970 = sst [smem:[#allocation10_spill]] %s5161_s25  ;;  %s41_s17 = sadd.s32 1, %s5169_s27 }
  0x17   : > { %5971 = sst [smem:[#allocation11_spill]] %s5165_s26  ;;  %p464_p1 = scmp.ne.s32.totalorder %s5153_s23, %s5149_s22 }
  0x18   : > { %5972 = sst [smem:[#allocation12_spill]] %s5169_s27  ;;  %p465_p2 = scmp.eq.s32.totalorder %s4142_s29, 3 }
  0x19   : > { %5973 = sst [smem:[#allocation13_spill]] %s5173_s28  ;;  %s6019_s0 = smov (%p39_p0, %s38_s0), 0 }
  0x1a   : > { %5974 = sst [smem:[#allocation14_spill]] %s6019_s0  ;;  %s6021_s17 = smov (!%p39_p0, %s41_s17), %s5169_s27 }
  0x1b   : > { %p5313_p3 = por %p465_p2, %p464_p1  ;;  %p470_p4 = scmp.ne.s32.totalorder %s5149_s22, %s5145_s21 }
  0x1c   : > { %p43_p5 = scmp.ge.s32.totalorder %s6021_s17, 2  ;;  %p471_p6 = scmp.eq.s32.totalorder %s4143_s30, 3 }
  0x1d   : > { %s5975_s18 = scalar_select %p5313_p3, 1, 0 }
  0x1e   : > { %p4146_p7 = scmp.ge.s32.totalorder %s5173_s28, 1  ;;  %p594_p8 = scmp.lt.s32.totalorder %s5173_s28, 5 }
  0x1f   : > { %5976 = sst [smem:[#allocation15_spill]] %s5975_s18  ;;  %s6023_s17 = smov (%p43_p5, %s6021_s17), 0 }
  0x20   : > { %5977 = sst [smem:[#allocation16_spill]] %s6023_s17  ;;  %p5323_p9 = por %p471_p6, %p470_p4 }
  0x21   : > { %p595_p10 = pnand %p4146_p7, %p594_p8  ;;  %s451_s20 = ssub.s32 %s5169_s27, %s6023_s17 }
  0x22   : > { %s5978_s19 = scalar_select %p5323_p9, 1, 0 }
  0x23   : > { %s454_s29 = sadd.s32 1, %s5153_s23  ;;  %p452_p11 = scmp.eq.s32.totalorder %s451_s20, 0 }
  0x24   : > { %5979 = sst [smem:[#allocation17_spill]] %s5978_s19  ;;  %598 = sbr.rel (%p595_p10) target bundleno = 4077 (0xfed), region = 84 }
  0x25   : > { %s5331_s0 = scalar_select %p452_p11, %s5153_s23, %s454_s29  }
  0x27   : > { %5980 = sst [smem:[#allocation18_spill]] %s5331_s0 }
  0x29   : > { %s5942_s30 = sand.u32 1, %s5149_s22   ;;  %p696_p12 = scmp.lt.s32.totalorder %s5161_s25, 1 }
  0x2a   : > { %s5337_s26 = sshll.u32 %s5942_s30, 3  ;;  %p711_p13 = scmp.lt.s32.totalorder %s5157_s24, 1 }
  0x2b   : > { %s5341_s19 = scalar_select %p696_p12, %s5161_s25, 1 }
  0x2c   : > { %s5344_s20 = scalar_select %p711_p13, %s5157_s24, 1 }
  0x2d   : > { %5981 = sst [smem:[#allocation19_spill]] %s5341_s19  ;;  %s5347_s29 = sshll.u32 %s5341_s19, 3 }
  0x2e   : > { %s5983_s21 = sld [smem:[#allocation20_spill]]  ;;  %s4901_s24 = smul.u32 384, %s5344_s20 }
  0x2f   : > { %s4414_s27 = sshll.u32 %s5344_s20, 5  ;;  %s4902_s17 = smul.u32 24, %s5344_s20 }
  0x30   : > { %s5985_s4 = sld [smem:[#allocation23_spill]]  ;;  %s4154_s15 = sshll.u32 %s5344_s20, 1 }
  0x31   : > { %s5986_s5 = sld [smem:[#allocation24_spill]]  ;;  %s4415_s1 = sshll.u32 %s5344_s20, 4 }
  0x32   : > { %s5987_s6 = sld [smem:[#allocation25_spill]]  ;;  %s744_s14 = scalar_lea.vmem %s5932_s11, %s5344_s20 }
  0x33   : > { %s5988_s7 = sld [smem:[#allocation26_spill]] }
  0x34   : > { %s699_s28 = scalar_lea.vmem %s5983_s21, %s5347_s29  ;;  %s5989_s8 = sld [smem:[#allocation27_spill]] }
  0x35   : > { %s695_s21 = scalar_lea.vmem [#allocation3], %s5337_s26 }
  0x36   : > { %s5371_s3 = scalar_lea.vmem %s5985_s4, %s4901_s24  ;;  %s5991_s4 = sld [smem:[#allocation9_spill]] }
  0x37   : > { %s5376_s0 = scalar_lea.vmem %s5986_s5, %s4414_s27 }
  0x38   : > { %s5381_s22 = scalar_lea.vmem %s5987_s6, %s4902_s17  ;;  %s5402_s17 = scalar_lea.vmem %s5931_s10, %s4414_s27 }
  0x39   : > { %s5387_s19 = scalar_lea.vmem %s5988_s7, %s4154_s15  ;;  %s4903_s15 = smul.u32 3, %s5344_s20 }
  0x3a   : > { %s5393_s30 = scalar_lea.vmem %s5989_s8, %s4415_s1  ;;  %s5990_s8 = sld [smem:[#allocation28_spill]] }
  0x3b   : > { %s5412_s13 = scalar_lea.vmem %s5933_s12, %s4903_s15 }
  0x3c   : > { %p4159_p0 = scmp.ne.s32.totalorder %s5991_s4, 0 }
  0x3e   : > { %757 = sbr.rel (%p4159_p0) target bundleno = 69 (0x45), region = 88 }
  0x40   : > { %s5417_s23 = scalar_lea.vmem %s5990_s8, %s4903_s15 }
  0x43   : > { %v758_v0 = vld [vmem:[%s699_s28] sm:$0xff]  ;;  %vm759_vm0 = vcmask 261120  }
  0x44   : > { %760 = vst.msk [vmem:[#allocation2] sm:$0xff] %vm759_vm0, %v758_v0 }
  0x45 PF: > { %vm767_vm1 = vcmask 261120   ;;  %v4978_v8 = vld [vmem:[%s5371_s3 + $0x8] sm:$0xff]   ;;  %v4979_v9 = vld [vmem:[%s5371_s3 + $0x18] sm:$0xff]   ;;  %v5175_v10 = vmov 0.0   ;;  %v4980_v11 = vld [vmem:[%s5371_s3] sm:$0xff]   ;;  %vm5176_vm2 = vmmov 0   ;;  %s5992_s6 = scalar_lea.vmem %s5923_s2, %s5347_s29 }
  0x46   : > { %4545 = vmatprep.subr.bf16.mxu0 %v5175_v10  ;;  %4553 = vmatprep.subr.bf16.mxu1 %v5175_v10  ;;  %v4981_v12 = vld [vmem:[%s5371_s3 + $0x10] sm:$0xff]   ;;  %v4160_v21 = vld [vmem:[%s5412_s13] ss:$0 sm:$0xff]  ;;  %v4982_v27 = vld [vmem:[%s5371_s3 + $0x28] sm:$0xff]   ;;  %vm1580_vm5 = vcmask 64512   ;;  %vm1831_vm6 = vcmask 1043456  }
  0x47   : > { %4546 = vmatpush3.bf16.msra.mxu0 %v4978_v8  ;;  %4554 = vmatpush3.bf16.msra.mxu1 %v4979_v9  ;;  %v4161_v24 = vld [vmem:[%s5417_s23] ss:$0 sm:$0xff]  ;;  %v4983_v28 = vld [vmem:[%s5371_s3 + $0x38] sm:$0xff]   ;;  %v4985_v31 = vld [vmem:[%s5371_s3 + $0x30] sm:$0xff]   ;;  %s5993_s28 = sld [smem:[#allocation21_spill]]  ;;  %vm3816_vm14 = vcmask 523264  }
  0x48   : > { %4547 = vmatprep.subr.bf16.mxu0 %v5175_v10  ;;  %4555 = vmatprep.subr.bf16.mxu1 %v5175_v10  ;;  %v4984_v30 = vld [vmem:[%s5371_s3 + $0x20] sm:$0xff]   ;;  %v4986_v32 = vld [vmem:[%s5371_s3 + $0x48] sm:$0xff]   ;;  %v4987_v33 = vld [vmem:[%s5371_s3 + $0x58] sm:$0xff]   ;;  %s5996_s18 = sld [smem:[#allocation22_spill]] }
  0x49   : > { %4549 = vmatprep.mubr.msk.bf16.mxu0 %vm5176_vm2, %v5175_v10  ;;  %4557 = vmatprep.mubr.msk.bf16.mxu1 %vm5176_vm2, %v5175_v10  ;;  %v4988_v34 = vld [vmem:[%s5371_s3 + $0x40] sm:$0xff]   ;;  %v4989_v35 = vld [vmem:[%s5371_s3 + $0x50] sm:$0xff]   ;;  %v4990_v36 = vld [vmem:[%s5371_s3 + $0x68] sm:$0xff]  }
  0x4a   : > { %v4991_v37 = vld [vmem:[%s5371_s3 + $0x78] sm:$0xff]   ;;  %v4992_v38 = vld [vmem:[%s5371_s3 + $0x60] sm:$0xff]   ;;  %v4993_v39 = vld [vmem:[%s5371_s3 + $0x70] sm:$0xff]  }
  0x4b   : > { %v761_v1 = vld [vmem:[#allocation2] sm:$0xff]  ;;  %4548 = vmatpush3.bf16.msra.mxu0 %v4980_v11  ;;  %4556 = vmatpush3.bf16.msra.mxu1 %v4981_v12  ;;  %v4994_v40 = vld [vmem:[%s5371_s3 + $0x88] sm:$0xff]   ;;  %v4995_v41 = vld [vmem:[%s5371_s3 + $0x98] sm:$0xff]  }
  0x4c   : > { %v768_v2 = vsel %vm767_vm1, %v761_v1, 0.0  ;;  %4561 = vmatprep.subr.bf16.mxu0 %v5175_v10  ;;  %4569 = vmatprep.subr.bf16.mxu1 %v5175_v10  ;;  %v4996_v42 = vld [vmem:[%s5371_s3 + $0x80] sm:$0xff]   ;;  %v4997_v43 = vld [vmem:[%s5371_s3 + $0x90] sm:$0xff]   ;;  %v4998_v44 = vld [vmem:[%s5371_s3 + $0xa8] sm:$0xff]  }
  0x4d   : > { %769 = vadd.xlane.f32.xlu0 %v768_v2  ;;  %v4999_v45 = vld [vmem:[%s5371_s3 + $0xb8] sm:$0xff]   ;;  %v5000_v46 = vld [vmem:[%s5371_s3 + $0xa0] sm:$0xff]   ;;  %v5001_v47 = vld [vmem:[%s5371_s3 + $0xb0] sm:$0xff]   ;;  %s5994_s27 = scalar_lea.vmem %s5993_s28, %s5347_s29 }
  0x4e   : > { %v4218_v0 = vld [vmem:[%s5381_s22 + $0x4] ss:$0 sm:$0xff]  ;;  %v4202_v11 = vld [vmem:[%s5381_s22] ss:$0 sm:$0xff]  ;;  %v4203_v12 = vld [vmem:[%s5381_s22 + $0x1] ss:$0 sm:$0xff] }
  0xd6   : > { %v770_v3 = vpop.xlane.xlu0 %769 }
  0xd7   : > { %v772_v4 = vmul.f32 0.03125, %v770_v3 }
  0xd9   : > { %v773_v5 = vsub.f32 %v761_v1, %v772_v4  ;;  %v4219_v1 = vld [vmem:[%s5381_s22 + $0x5] ss:$0 sm:$0xff] }
  0xdb   : > { %v774_v6 = vmul.f32 %v773_v5, %v773_v5  ;;  %v794_v22 = vmul.f32 %v4160_v21, %v773_v5 }
  0xdd   : > { %v775_v7 = vsel %vm767_vm1, %v774_v6, 0.0 }
  0xde   : > { %776 = vadd.xlane.f32.xlu0 %v775_v7 }
 0x167   : > { %v777_v13 = vpop.xlane.xlu0 %776 }
 0x168   : > { %v778_v14 = vmul.f32 0.032258064, %v777_v13 }
 0x16a   : > { %5032 = vrsqrt.f32 %v778_v14  ;;  %vm781_vm3 = vcmp.eq.f32.partialorder %v778_v14, inf  ;;  %v784_v17 = vand.u32 2147483648, %v778_v14  ;;  %vm783_vm4 = vcmp.eq.f32.partialorder %v778_v14, 0.0 }
 0x177   : > { %v5033_v15 = vpop.eup %5032 }
 0x178   : > { %v780_v16 = vmul.f32 %v5033_v15, %v778_v14 }
 0x17a   : > { %v782_v18 = vsel %vm781_vm3, %v778_v14, %v780_v16 }
 0x17b   : > { %v785_v19 = vsel %vm783_vm4, %v784_v17, %v782_v18 }
 0x17c   : > { %v786_v20 = vadd.f32 1e-06, %v785_v19  ;;  %v4220_v19 = vld [vmem:[%s5381_s22 + $0x6] ss:$0 sm:$0xff] }
 0x17e   : > { %5034 = vrcp.f32 %v786_v20  ;;  %v4221_v20 = vld [vmem:[%s5381_s22 + $0x7] ss:$0 sm:$0xff] }
 0x18b   : > { %v5035_v23 = vpop.eup %5034 }
 0x18c   : > { %v795_v25 = vmul.f32 %v5035_v23, %v794_v22 }
 0x18e   : > { %v802_v26 = vadd.f32 %v4161_v24, %v795_v25 }
 0x190   : > { %v5441_v29 = vpack.c.bf16 %v802_v26, %v802_v26 }
 0x192   : > { %4550 = vmatmul.mubr.msk.bf16.vlgmr.msra.gmra.mxu0 %vm767_vm1, %v5441_v29  ;;  %4558 = vmatmul.mubr.msk.bf16.vlgmr.msra.gmra.mxu1 %vm767_vm1, %v5441_v29 }
 0x193   : > { %4562 = vmatpush3.bf16.msra.mxu0 %v4982_v27  ;;  %4570 = vmatpush3.bf16.msra.mxu1 %v4983_v28 }
 0x194   : > { %4563 = vmatprep.subr.bf16.mxu0 %v5175_v10  ;;  %4571 = vmatprep.subr.bf16.mxu1 %v5175_v10 }
 0x195   : > { %4565 = vmatprep.mubr.msk.bf16.mxu0 %vm5176_vm2, %v5175_v10  ;;  %4573 = vmatprep.mubr.msk.bf16.mxu1 %vm5176_vm2, %v5175_v10 }
 0x197   : > { %4564 = vmatpush3.bf16.msra.mxu0 %v4984_v30  ;;  %4572 = vmatpush3.bf16.msra.mxu1 %v4985_v31 }
 0x198   : > { %4577 = vmatprep.subr.bf16.mxu0 %v5175_v10  ;;  %4585 = vmatprep.subr.bf16.mxu1 %v5175_v10 }
 0x19a   : > { %4566 = vmatmul.mubr.msk.bf16.vlgmr.msra.gmra.mxu0 %vm767_vm1, %v5441_v29  ;;  %4574 = vmatmul.mubr.msk.bf16.vlgmr.msra.gmra.mxu1 %vm767_vm1, %v5441_v29 }
 0x19b   : > { %4578 = vmatpush3.bf16.msra.mxu0 %v4986_v32  ;;  %4586 = vmatpush3.bf16.msra.mxu1 %v4987_v33  ;;  %v4204_v33 = vld [vmem:[%s5381_s22 + $0x2] ss:$0 sm:$0xff] }
 0x19c   : > { %4579 = vmatprep.subr.bf16.mxu0 %v5175_v10  ;;  %4587 = vmatprep.subr.bf16.mxu1 %v5175_v10 }
 0x19d   : > { %4581 = vmatprep.mubr.msk.bf16.mxu0 %vm5176_vm2, %v5175_v10  ;;  %4589 = vmatprep.mubr.msk.bf16.mxu1 %vm5176_vm2, %v5175_v10 }
 0x19f   : > { %4580 = vmatpush3.bf16.msra.mxu0 %v4988_v34  ;;  %4588 = vmatpush3.bf16.msra.mxu1 %v4989_v35  ;;  %v4205_v34 = vld [vmem:[%s5381_s22 + $0x3] ss:$0 sm:$0xff] }
 0x1a0   : > { %4593 = vmatprep.subr.bf16.mxu0 %v5175_v10  ;;  %4601 = vmatprep.subr.bf16.mxu1 %v5175_v10 }
 0x1a2   : > { %4582 = vmatmul.mubr.msk.bf16.vlgmr.msra.gmra.mxu0 %vm767_vm1, %v5441_v29  ;;  %4590 = vmatmul.mubr.msk.bf16.vlgmr.msra.gmra.mxu1 %vm767_vm1, %v5441_v29 }
 0x1a3   : > { %4594 = vmatpush3.bf16.msra.mxu0 %v4990_v36  ;;  %4602 = vmatpush3.bf16.msra.mxu1 %v4991_v37 }
 0x1a4   : > { %4595 = vmatprep.subr.bf16.mxu0 %v5175_v10  ;;  %4603 = vmatprep.subr.bf16.mxu1 %v5175_v10 }
 0x1a5   : > { %4597 = vmatprep.mubr.msk.bf16.mxu0 %vm5176_vm2, %v5175_v10  ;;  %4605 = vmatprep.mubr.msk.bf16.mxu1 %vm5176_vm2, %v5175_v10 }
 0x1a7   : > { %4596 = vmatpush3.bf16.msra.mxu0 %v4992_v38  ;;  %4604 = vmatpush3.bf16.msra.mxu1 %v4993_v39 }
 0x1a8   : > { %4609 = vmatprep.subr.bf16.mxu0 %v5175_v10  ;;  %4617 = vmatprep.subr.bf16.mxu1 %v5175_v10 }
 0x1aa   : > { %4598 = vmatmul.mubr.msk.bf16.vlgmr.msra.gmra.mxu0 %vm767_vm1, %v5441_v29  ;;  %4606 = vmatmul.mubr.msk.bf16.vlgmr.msra.gmra.mxu1 %vm767_vm1, %v5441_v29 }
 0x1ab   : > { %4610 = vmatpush3.bf16.msra.mxu0 %v4994_v40  ;;  %4618 = vmatpush3.bf16.msra.mxu1 %v4995_v41  ;;  %v4234_v41 = vld [vmem:[%s5381_s22 + $0x8] ss:$0 sm:$0xff] }
 0x1ac   : > { %4611 = vmatprep.subr.bf16.mxu0 %v5175_v10  ;;  %4619 = vmatprep.subr.bf16.mxu1 %v5175_v10 }
 0x1ad   : > { %4613 = vmatprep.mubr.msk.bf16.mxu0 %vm5176_vm2, %v5175_v10  ;;  %4621 = vmatprep.mubr.msk.bf16.mxu1 %vm5176_vm2, %v5175_v10 }
 0x1af   : > { %4612 = vmatpush3.bf16.msra.mxu0 %v4996_v42  ;;  %4620 = vmatpush3.bf16.msra.mxu1 %v4997_v43  ;;  %v4235_v42 = vld [vmem:[%s5381_s22 + $0x9] ss:$0 sm:$0xff] }
 0x1b0   : > { %4625 = vmatprep.subr.bf16.mxu0 %v5175_v10  ;;  %4633 = vmatprep.subr.bf16.mxu1 %v5175_v10 }
 0x1b2   : > { %4614 = vmatmul.mubr.msk.bf16.vlgmr.msra.gmra.mxu0 %vm767_vm1, %v5441_v29  ;;  %4622 = vmatmul.mubr.msk.bf16.vlgmr.msra.gmra.mxu1 %vm767_vm1, %v5441_v29 }
 0x1b3   : > { %4626 = vmatpush3.bf16.msra.mxu0 %v4998_v44  ;;  %4634 = vmatpush3.bf16.msra.mxu1 %v4999_v45 }
 0x1b4   : > { %4627 = vmatprep.subr.bf16.mxu0 %v5175_v10  ;;  %4635 = vmatprep.subr.bf16.mxu1 %v5175_v10 }
 0x1b5   : > { %4629 = vmatprep.mubr.msk.bf16.mxu0 %vm5176_vm2, %v5175_v10  ;;  %4637 = vmatprep.mubr.msk.bf16.mxu1 %vm5176_vm2, %v5175_v10 }
 0x1b7   : > { %4628 = vmatpush3.bf16.msra.mxu0 %v5000_v46  ;;  %4636 = vmatpush3.bf16.msra.mxu1 %v5001_v47 }
 0x1b8   : > { %4641 = vmatprep.subr.bf16.mxu0 %v5175_v10  ;;  %4647 = vmatprep.subr.bf16.mxu1 %v5175_v10 }
 0x1ba   : > { %4630 = vmatmul.mubr.msk.bf16.vlgmr.msra.gmra.mxu0 %vm767_vm1, %v5441_v29  ;;  %4638 = vmatmul.mubr.msk.bf16.vlgmr.msra.gmra.mxu1 %vm767_vm1, %v5441_v29 }
 0x1bb   : > { %4643 = vmatprep.mubr.msk.bf16.mxu0 %vm5176_vm2, %v5175_v10  ;;  %4649 = vmatprep.mubr.msk.bf16.mxu1 %vm5176_vm2, %v5175_v10 }
 0x252   : > { %v946_v48 = vpop.f32.mrf.mxu0  ;;  %v998_v49 = vpop.f32.mrf.mxu1 }
 0x253   : > { %v947_v21 = vadd.f32 %v4202_v11, %v946_v48  ;;  %v999_v22 = vadd.f32 %v4203_v12, %v998_v49 }
 0x254   : > { %v4551_v50 = vpop.f32.mrf.mxu0  ;;  %v4559_v51 = vpop.f32.mrf.mxu1 }
 0x255   : > { %v1572_v29 = vpack.c.bf16 %v947_v21, %v947_v21  ;;  %v1573_v30 = vpack.c.bf16 %v999_v22, %v999_v22 }
 0x256   : > { %v949_v52 = vpop.f32.mrf.mxu0  ;;  %v1001_v53 = vpop.f32.mrf.mxu1 }
 0x258   : > { %v4552_v54 = vpop.f32.mrf.mxu0  ;;  %v4560_v55 = vpop.f32.mrf.mxu1 }
 0x25a   : > { %v1050_v56 = vpop.f32.mrf.mxu0  ;;  %v1102_v57 = vpop.f32.mrf.mxu1 }
 0x25b   : > { %v1051_v43 = vadd.f32 %v4204_v33, %v1050_v56  ;;  %v1103_v44 = vadd.f32 %v4205_v34, %v1102_v57 }
 0x25c   : > { %v4567_v58 = vpop.f32.mrf.mxu0  ;;  %v4575_v59 = vpop.f32.mrf.mxu1 }
 0x25d   : > { %v1574_v51 = vpack.c.bf16 %v1051_v43, %v1051_v43  ;;  %v1575_v52 = vpack.c.bf16 %v1103_v44, %v1103_v44 }
 0x25e   : > { %v1053_v60 = vpop.f32.mrf.mxu0  ;;  %v1105_v61 = vpop.f32.mrf.mxu1 }
 0x260   : > { %v4568_v62 = vpop.f32.mrf.mxu0  ;;  %v4576_v63 = vpop.f32.mrf.mxu1 }
 0x262   : > { %v1178_v2 = vpop.f32.mrf.mxu0  ;;  %v1230_v3 = vpop.f32.mrf.mxu1 }
 0x263   : > { %v1179_v4 = vadd.f32 %v4218_v0, %v1178_v2  ;;  %v1231_v5 = vadd.f32 %v4219_v1, %v1230_v3 }
 0x264   : > { %v4583_v6 = vpop.f32.mrf.mxu0  ;;  %v4591_v7 = vpop.f32.mrf.mxu1 }
 0x265   : > { %v1576_v8 = vpack.c.bf16 %v1179_v4, %v1179_v4  ;;  %v1577_v9 = vpack.c.bf16 %v1231_v5, %v1231_v5  ;;  %v763_v5 = vld [vmem:[%s5992_s6] sm:$0xff] }
 0x266   : > { %v1181_v13 = vpop.f32.mrf.mxu0  ;;  %v1233_v14 = vpop.f32.mrf.mxu1  ;;  %vm1769_vm7 = vcmp.gt.f32.partialorder %v763_v5, 0.0 }
 0x267   : > { %v1585_v15 = vsel %vm1580_vm5, %v1576_v8, 0  ;;  %v1631_v16 = vsel %vm1580_vm5, %v1577_v9, 0 }
 0x268   : > { %v4584_v17 = vpop.f32.mrf.mxu0  ;;  %v4592_v18 = vpop.f32.mrf.mxu1  ;;  %4642 = vmatpush3.bf16.xpose.msra.mxu0 %v1585_v15  ;;  %4648 = vmatpush3.bf16.xpose.msra.mxu1 %v1631_v16 }
 0x269   : > { %4653 = vmatprep.subr.bf16.mxu0 %v5175_v10  ;;  %4659 = vmatprep.subr.bf16.mxu1 %v5175_v10 }
 0x26a   : > { %v1282_v23 = vpop.f32.mrf.mxu0  ;;  %v1334_v24 = vpop.f32.mrf.mxu1 }
 0x26b   : > { %v1283_v25 = vadd.f32 %v4220_v19, %v1282_v23  ;;  %v1335_v26 = vadd.f32 %v4221_v20, %v1334_v24 }
 0x26c   : > { %v4599_v27 = vpop.f32.mrf.mxu0  ;;  %v4607_v28 = vpop.f32.mrf.mxu1 }
 0x26d   : > { %v1578_v31 = vpack.c.bf16 %v1283_v25, %v1283_v25  ;;  %v1579_v32 = vpack.c.bf16 %v1335_v26, %v1335_v26 }
 0x26e   : > { %v1285_v35 = vpop.f32.mrf.mxu0  ;;  %v1337_v36 = vpop.f32.mrf.mxu1 }
 0x26f   : > { %v1677_v37 = vsel %vm1580_vm5, %v1578_v31, 0  ;;  %v1723_v38 = vsel %vm1580_vm5, %v1579_v32, 0  ;;  %4644 = vmatmul.mubr.msk.bf16.vlgmr.msra.gmra.mxu0 %vm1580_vm5, %v1572_v29  ;;  %4650 = vmatmul.mubr.msk.bf16.vlgmr.msra.gmra.mxu1 %vm1580_vm5, %v1573_v30 }
 0x270   : > { %v4600_v39 = vpop.f32.mrf.mxu0  ;;  %v4608_v40 = vpop.f32.mrf.mxu1  ;;  %4654 = vmatpush3.bf16.xpose.msra.mxu0 %v1677_v37  ;;  %4660 = vmatpush3.bf16.xpose.msra.mxu1 %v1723_v38 }
 0x271   : > { %4655 = vmatprep.mubr.msk.bf16.mxu0 %vm5176_vm2, %v5175_v10  ;;  %4661 = vmatprep.mubr.msk.bf16.mxu1 %vm5176_vm2, %v5175_v10 }
 0x272   : > { %v1410_v45 = vpop.f32.mrf.mxu0  ;;  %v1462_v46 = vpop.f32.mrf.mxu1  ;;  %4665 = vmatprep.subr.bf16.mxu0 %v5175_v10  ;;  %4671 = vmatprep.subr.bf16.mxu1 %v5175_v10 }
 0x273   : > { %v1411_v47 = vadd.f32 %v4234_v41, %v1410_v45  ;;  %v1463_v48 = vadd.f32 %v4235_v42, %v1462_v46 }
 0x274   : > { %v4615_v49 = vpop.f32.mrf.mxu0  ;;  %v4623_v50 = vpop.f32.mrf.mxu1 }
 0x275   : > { %v1824_v53 = vpack.c.bf16 %v1411_v47, %v1411_v47  ;;  %v1825_v54 = vpack.c.bf16 %v1463_v48, %v1463_v48 }
 0x276   : > { %v1413_v55 = vpop.f32.mrf.mxu0  ;;  %v1465_v56 = vpop.f32.mrf.mxu1 }
 0x277   : > { %v1833_v57 = vsel %vm1831_vm6, %v1824_v53, 0  ;;  %v1879_v58 = vsel %vm1831_vm6, %v1825_v54, 0  ;;  %4656 = vmatmul.mubr.msk.bf16.vlgmr.msra.gmra.mxu0 %vm1580_vm5, %v1574_v51  ;;  %4662 = vmatmul.mubr.msk.bf16.vlgmr.msra.gmra.mxu1 %vm1580_vm5, %v1575_v52 }
 0x278   : > { %v4616_v59 = vpop.f32.mrf.mxu0  ;;  %v4624_v60 = vpop.f32.mrf.mxu1  ;;  %4666 = vmatpush3.bf16.msra.mxu0 %v1833_v57  ;;  %4672 = vmatpush3.bf16.msra.mxu1 %v1879_v58  ;;  %v4236_v57 = vld [vmem:[%s5381_s22 + $0xa] ss:$0 sm:$0xff] }
 0x279   : > { %4667 = vmatprep.mubr.msk.bf16.mxu0 %vm5176_vm2, %v5175_v10  ;;  %4677 = vmatprep.subr.bf16.mxu0 %v5175_v10 }
 0x27a   : > { %v5560_v61 = vpop.f32.mrf.mxu0  ;;  %v5562_v62 = vpop.f32.mrf.mxu1  ;;  %4673 = vmatprep.mubr.msk.bf16.mxu1 %vm5176_vm2, %v5175_v10  ;;  %4683 = vmatprep.subr.bf16.mxu1 %v5175_v10 }
 0x27b   : > { %v1515_v60 = vadd.f32 %v4236_v57, %v5560_v61 }
 0x27c   : > { %v4631_v63 = vpop.f32.mrf.mxu0  ;;  %v4639_v0 = vpop.f32.mrf.mxu1 }
 0x27d   : > { %v4237_v63 = vld [vmem:[%s5381_s22 + $0xb] ss:$0 sm:$0xff] }
 0x27e   : > { %v1517_v1 = vpop.f32.mrf.mxu0  ;;  %v1569_v2 = vpop.f32.mrf.mxu1 }
 0x27f   : > { %v1826_v1 = vpack.c.bf16 %v1515_v60, %v1515_v60  ;;  %v1567_v2 = vadd.f32 %v4237_v63, %v5562_v62  ;;  %v4262_v63 = vld [vmem:[%s5387_s19] ss:$0 sm:$0xff] }
 0x280   : > { %v4632_v3 = vpop.f32.mrf.mxu0  ;;  %v4640_v4 = vpop.f32.mrf.mxu1 }
 0x32f   : > { %v1621_v6 = vpop.f32.mrf.mxu0  ;;  %v1667_v7 = vpop.f32.mrf.mxu1 }
 0x330   : > { %v1765_v8 = vmul.f32 0.35355338, %v1621_v6  ;;  %v1766_v9 = vmul.f32 0.35355338, %v1667_v7  ;;  %v1925_v6 = vsel %vm1831_vm6, %v1826_v1, 0  ;;  %v1827_v7 = vpack.c.bf16 %v1567_v2, %v1567_v2 }
 0x331   : > { %v4645_v11 = vpop.f32.mrf.mxu0  ;;  %v4651_v12 = vpop.f32.mrf.mxu1 }
 0x332   : > { %v1772_v13 = vsel %vm1769_vm7, %v1765_v8, -1e+09  ;;  %v1773_v17 = vsel %vm1769_vm7, %v1766_v9, -1e+09  ;;  %v1971_v62 = vsel %vm1831_vm6, %v1827_v7, 0  ;;  %v5076_v7 = vld [vmem:[#allocation2] sm:$0xff] }
 0x333   : > { %v1624_v14 = vpop.f32.mrf.mxu0  ;;  %v1670_v15 = vpop.f32.mrf.mxu1  ;;  %v1776_v16 = vsel %vm1580_vm5, %v1772_v13, -inf  ;;  %v1779_v22 = vsel %vm1580_vm5, %v1773_v17, -inf  ;;  %v853_v12 = vld [vmem:[%s5376_s0] sm:$0xf] }
 0x334   : > { %1777 = vmax.xlane.f32.xlu1 %v1776_v16  ;;  %v2021_v16 = vsel %vm1831_vm6, %v853_v12, 0 }
 0x335   : > { %v4646_v18 = vpop.f32.mrf.mxu0  ;;  %v4652_v19 = vpop.f32.mrf.mxu1 }
 0x336   : > { %v854_v18 = vld [vmem:[%s5376_s0 + $0x4] sm:$0xf] }
 0x337   : > { %v1713_v20 = vpop.f32.mrf.mxu0  ;;  %v1759_v21 = vpop.f32.mrf.mxu1  ;;  %v2067_v19 = vsel %vm1831_vm6, %v854_v18, 0 }
 0x338   : > { %v1767_v23 = vmul.f32 0.35355338, %v1713_v20  ;;  %v1768_v24 = vmul.f32 0.35355338, %v1759_v21  ;;  %1780 = vmax.xlane.f32.xlu1 %v1779_v22  ;;  %v855_v20 = vld [vmem:[%s5376_s0 + $0x8] sm:$0xf] }
 0x339   : > { %v4657_v25 = vpop.f32.mrf.mxu0  ;;  %v4663_v26 = vpop.f32.mrf.mxu1 }
 0x33a   : > { %v1775_v27 = vsel %vm1769_vm7, %v1768_v24, -1e+09  ;;  %v1774_v28 = vsel %vm1769_vm7, %v1767_v23, -1e+09  ;;  %v2113_v23 = vsel %vm1831_vm6, %v855_v20, 0 }
 0x33b   : > { %v1716_v29 = vpop.f32.mrf.mxu0  ;;  %v1762_v30 = vpop.f32.mrf.mxu1  ;;  %v1785_v31 = vsel %vm1580_vm5, %v1775_v27, -inf  ;;  %v1782_v32 = vsel %vm1580_vm5, %v1774_v28, -inf  ;;  %v856_v25 = vld [vmem:[%s5376_s0 + $0xc] sm:$0xf] }
 0x33c   : > { %1786 = vmax.xlane.f32.xlu1 %v1785_v31  ;;  %1783 = vmax.xlane.f32.xlu0 %v1782_v32  ;;  %v2159_v29 = vsel %vm1831_vm6, %v856_v25, 0 }
 0x33d   : > { %v4658_v33 = vpop.f32.mrf.mxu0  ;;  %v4664_v34 = vpop.f32.mrf.mxu1 }
 0x3bd   : > { %v1778_v35 = vpop.xlane.xlu1 %1777 }
 0x3be   : > { %v1788_v36 = vsub.f32 %v1772_v13, %v1778_v35 }
 0x3c0   : > { %v1792_v37 = vmul.f32 1.442695, %v1788_v36 }
 0x3c1   : > { %v1781_v38 = vpop.xlane.xlu1 %1780 }
 0x3c2   : > { %5036 = vpow2.f32 %v1792_v37  ;;  %v1789_v39 = vsub.f32 %v1773_v17, %v1781_v38 }
 0x3c4   : > { %v1794_v40 = vmul.f32 1.442695, %v1789_v39 }
 0x3c5   : > { %v1787_v41 = vpop.xlane.xlu1 %1786  ;;  %v1784_v42 = vpop.xlane.xlu0 %1783 }
 0x3c6   : > { %5038 = vpow2.f32 %v1794_v40  ;;  %v1791_v43 = vsub.f32 %v1775_v27, %v1787_v41  ;;  %v1790_v44 = vsub.f32 %v1774_v28, %v1784_v42 }
 0x3c8   : > { %v1798_v45 = vmul.f32 1.442695, %v1791_v43  ;;  %v1796_v46 = vmul.f32 1.442695, %v1790_v44 }
 0x3ca   : > { %5040 = vpow2.f32 %v1798_v45 }
 0x3cb   : > { %5042 = vpow2.f32 %v1796_v46 }
 0x3cf   : > { %v5037_v47 = vpop.eup %5036 }
 0x3d0   : > { %v1800_v48 = vsel %vm1580_vm5, %v5037_v47, 0.0 }
 0x3d1   : > { %1801 = vadd.xlane.f32.xlu0 %v1800_v48 }
 0x3d3   : > { %v5039_v49 = vpop.eup %5038 }
 0x3d4   : > { %v1803_v50 = vsel %vm1580_vm5, %v5039_v49, 0.0 }
 0x3d5   : > { %1804 = vadd.xlane.f32.xlu1 %v1803_v50 }
 0x3d7   : > { %v5041_v51 = vpop.eup %5040 }
 0x3d8   : > { %v5043_v52 = vpop.eup %5042  ;;  %v1809_v53 = vsel %vm1580_vm5, %v5041_v51, 0.0 }
 0x3d9   : > { %1810 = vadd.xlane.f32.xlu1 %v1809_v53  ;;  %v1806_v54 = vsel %vm1580_vm5, %v5043_v52, 0.0 }
 0x3da   : > { %1807 = vadd.xlane.f32.xlu0 %v1806_v54 }
 0x45a   : > { %v1802_v55 = vpop.xlane.xlu0 %1801 }
 0x45b   : > { %5044 = vrcp.f32 %v1802_v55 }
 0x45e   : > { %v1805_v56 = vpop.xlane.xlu1 %1804 }
 0x45f   : > { %5046 = vrcp.f32 %v1805_v56 }
 0x462   : > { %v1811_v58 = vpop.xlane.xlu1 %1810 }
 0x463   : > { %5048 = vrcp.f32 %v1811_v58  ;;  %v1808_v59 = vpop.xlane.xlu0 %1807 }
 0x464   : > { %5050 = vrcp.f32 %v1808_v59 }
 0x468   : > { %v5045_v0 = vpop.eup %5044 }
 0x469   : > { %v1816_v3 = vmul.f32 %v5045_v0, %v5037_v47 }
 0x46b   : > { %v1820_v4 = vpack.c.bf16 %v1816_v3, %v1816_v3 }
 0x46c   : > { %v5047_v5 = vpop.eup %5046 }
 0x46d   : > { %4668 = vmatmul.mubr.msk.bf16.vlgmr.msra.gmra.mxu0 %vm1580_vm5, %v1820_v4  ;;  %v1817_v8 = vmul.f32 %v5047_v5, %v5039_v49 }
 0x46e   : > { %4678 = vmatpush3.bf16.msra.mxu0 %v1925_v6  ;;  %4679 = vmatprep.mubr.msk.bf16.mxu0 %vm5176_vm2, %v5175_v10 }
 0x46f   : > { %v1821_v61 = vpack.c.bf16 %v1817_v8, %v1817_v8  ;;  %4689 = vmatprep.subr.bf16.mxu0 %v5175_v10 }
 0x470   : > { %v5049_v9 = vpop.eup %5048 }
 0x471   : > { %v5051_v11 = vpop.eup %5050  ;;  %4674 = vmatmul.mubr.msk.bf16.vlgmr.msra.gmra.mxu1 %vm1580_vm5, %v1821_v61  ;;  %v1819_v14 = vmul.f32 %v5049_v9, %v5041_v51 }
 0x472   : > { %4684 = vmatpush3.bf16.msra.mxu1 %v1971_v62  ;;  %v1818_v13 = vmul.f32 %v5051_v11, %v5043_v52  ;;  %4685 = vmatprep.mubr.msk.bf16.mxu1 %vm5176_vm2, %v5175_v10 }
 0x473   : > { %4695 = vmatprep.subr.bf16.mxu1 %v5175_v10  ;;  %v1823_v17 = vpack.c.bf16 %v1819_v14, %v1819_v14  ;;  %v5002_v14 = vld [vmem:[%s5371_s3 + $0xc8] sm:$0xff]  }
 0x474   : > { %v1822_v15 = vpack.c.bf16 %v1818_v13, %v1818_v13 }
 0x476   : > { %4680 = vmatmul.mubr.msk.bf16.vlgmr.msra.gmra.mxu0 %vm1580_vm5, %v1822_v15  ;;  %v5003_v15 = vld [vmem:[%s5371_s3 + $0xd8] sm:$0xff]  }
 0x477   : > { %4690 = vmatpush3.bf16.msra.mxu0 %v2021_v16  ;;  %4691 = vmatprep.mubr.msk.bf16.mxu0 %vm5176_vm2, %v5175_v10  ;;  %v5004_v16 = vld [vmem:[%s5371_s3 + $0xc0] sm:$0xff]  }
 0x478   : > { %4701 = vmatprep.subr.bf16.mxu0 %v5175_v10 }
 0x479   : > { %4686 = vmatmul.mubr.msk.bf16.vlgmr.msra.gmra.mxu1 %vm1580_vm5, %v1823_v17  ;;  %v5005_v17 = vld [vmem:[%s5371_s3 + $0xd0] sm:$0xff]  }
 0x47a   : > { %4697 = vmatprep.mubr.msk.bf16.mxu1 %vm5176_vm2, %v5175_v10  ;;  %4696 = vmatpush3.bf16.msra.mxu1 %v2067_v19 }
 0x47b   : > { %4707 = vmatprep.subr.bf16.mxu1 %v5175_v10 }
 0x52d   : > { %v1869_v21 = vpop.f32.mrf.mxu0 }
 0x52e   : > { %v2013_v22 = vpack.c.bf16 %v1869_v21, %v1869_v21 }
 0x52f   : > { %v4669_v24 = vpop.f32.mrf.mxu0 }
 0x530   : > { %4692 = vmatmul.mubr.msk.bf16.vlgmr.msra.gmra.mxu0 %vm1580_vm5, %v2013_v22 }
 0x531   : > { %v1872_v26 = vpop.f32.mrf.mxu0  ;;  %v1915_v27 = vpop.f32.mrf.mxu1  ;;  %4702 = vmatpush3.bf16.msra.mxu0 %v2113_v23  ;;  %4703 = vmatprep.mubr.msk.bf16.mxu0 %vm5176_vm2, %v5175_v10 }
 0x532   : > { %v2014_v28 = vpack.c.bf16 %v1915_v27, %v1915_v27  ;;  %4713 = vmatprep.subr.bf16.mxu0 %v5175_v10  ;;  %v4265_v26 = vld [vmem:[%s5412_s13 + $0x1] ss:$0 sm:$0xff] }
 0x533   : > { %v4670_v30 = vpop.f32.mrf.mxu0  ;;  %v4675_v31 = vpop.f32.mrf.mxu1 }
 0x534   : > { %4698 = vmatmul.mubr.msk.bf16.vlgmr.msra.gmra.mxu1 %vm1580_vm5, %v2014_v28 }
 0x535   : > { %v1918_v32 = vpop.f32.mrf.mxu1  ;;  %4708 = vmatpush3.bf16.msra.mxu1 %v2159_v29  ;;  %4709 = vmatprep.mubr.msk.bf16.mxu1 %vm5176_vm2, %v5175_v10  ;;  %v4266_v29 = vld [vmem:[%s5417_s23 + $0x1] ss:$0 sm:$0xff] }
 0x536   : > { %v1961_v33 = vpop.f32.mrf.mxu0  ;;  %4721 = vmatprep.subr.bf16.mxu1 %v5175_v10  ;;  %v5006_v32 = vld [vmem:[%s5371_s3 + $0xe8] sm:$0xff]  }
 0x537   : > { %v2015_v34 = vpack.c.bf16 %v1961_v33, %v1961_v33  ;;  %v4676_v35 = vpop.f32.mrf.mxu1  ;;  %v5007_v33 = vld [vmem:[%s5371_s3 + $0xf8] sm:$0xff]  }
 0x538   : > { %v4681_v36 = vpop.f32.mrf.mxu0  ;;  %v5008_v35 = vld [vmem:[%s5371_s3 + $0xe0] sm:$0xff]  }
 0x539   : > { %4704 = vmatmul.mubr.msk.bf16.vlgmr.msra.gmra.mxu0 %vm1580_vm5, %v2015_v34  ;;  %v2007_v37 = vpop.f32.mrf.mxu1  ;;  %v5009_v36 = vld [vmem:[%s5371_s3 + $0xf0] sm:$0xff]  }
 0x53a   : > { %v1964_v38 = vpop.f32.mrf.mxu0  ;;  %v2016_v39 = vpack.c.bf16 %v2007_v37, %v2007_v37  ;;  %4717 = vmatprep.mubr.msk.bf16.mxu0 %vm5176_vm2, %v5175_v10  ;;  %4714 = vmatpush3.bf16.msra.mxu0 %v5002_v14  ;;  %v5010_v37 = vld [vmem:[%s5371_s3 + $0x108] sm:$0xff]  }
 0x53b   : > { %v4687_v40 = vpop.f32.mrf.mxu1  ;;  %4715 = vmatprep.subr.bf16.mxu0 %v5175_v10  ;;  %v5011_v38 = vld [vmem:[%s5371_s3 + $0x118] sm:$0xff]  }
 0x53c   : > { %v4682_v41 = vpop.f32.mrf.mxu0  ;;  %4710 = vmatmul.mubr.msk.bf16.vlgmr.msra.gmra.mxu1 %vm1580_vm5, %v2016_v39  ;;  %v5012_v39 = vld [vmem:[%s5371_s3 + $0x100] sm:$0xff]   ;;  %v5013_v40 = vld [vmem:[%s5371_s3 + $0x110] sm:$0xff]  }
 0x53d   : > { %v2010_v42 = vpop.f32.mrf.mxu1  ;;  %4725 = vmatprep.mubr.msk.bf16.mxu1 %vm5176_vm2, %v5175_v10  ;;  %4722 = vmatpush3.bf16.msra.mxu1 %v5003_v15  ;;  %v762_v41 = vld [vmem:[%s5994_s27] sm:$0xff] }
 0x53e   : > { %4723 = vmatprep.subr.bf16.mxu1 %v5175_v10  ;;  %4716 = vmatpush3.bf16.msra.mxu0 %v5004_v16  ;;  %v2328_v42 = vpack.c.bf16 %v762_v41, %v762_v41  ;;  %v4334_v41 = vld [vmem:[%s5381_s22 + $0xe] ss:$0 sm:$0xff] }
 0x53f   : > { %v4688_v43 = vpop.f32.mrf.mxu1  ;;  %4729 = vmatprep.subr.bf16.mxu0 %v5175_v10 }
 0x540   : > { %v5014_v43 = vld [vmem:[%s5371_s3 + $0x128] sm:$0xff]  }
 0x541   : > { %4724 = vmatpush3.bf16.msra.mxu1 %v5005_v17 }
 0x542   : > { %4737 = vmatprep.subr.bf16.mxu1 %v5175_v10 }
 0x5f0   : > { %v2057_v44 = vpop.f32.mrf.mxu0 }
 0x5f1   : > { %v2201_v52 = vsel %vm767_vm1, %v2057_v44, 0.0  ;;  %v5015_v44 = vld [vmem:[%s5371_s3 + $0x138] sm:$0xff]  }
 0x5f2   : > { %v4693_v45 = vpop.f32.mrf.mxu0 }
 0x5f3   : > { %v5016_v45 = vld [vmem:[%s5371_s3 + $0x120] sm:$0xff]  }
 0x5f4   : > { %v2060_v46 = vpop.f32.mrf.mxu0  ;;  %v2103_v47 = vpop.f32.mrf.mxu1 }
 0x5f5   : > { %v2202_v50 = vsel %vm767_vm1, %v2103_v47, 0.0  ;;  %v5017_v46 = vld [vmem:[%s5371_s3 + $0x130] sm:$0xff]   ;;  %v5018_v47 = vld [vmem:[%s5371_s3 + $0x148] sm:$0xff]  }
 0x5f6   : > { %v4694_v48 = vpop.f32.mrf.mxu0  ;;  %v4699_v49 = vpop.f32.mrf.mxu1  ;;  %v2203_v54 = vadd.f32 %v2202_v50, %v2201_v52  ;;  %v5021_v50 = vld [vmem:[%s5371_s3 + $0x150] sm:$0xff]   ;;  %v5023_v52 = vld [vmem:[%s5371_s3 + $0x178] sm:$0xff]  }
 0x5f7   : > { %v5019_v48 = vld [vmem:[%s5371_s3 + $0x158] sm:$0xff]   ;;  %v5020_v49 = vld [vmem:[%s5371_s3 + $0x140] sm:$0xff]  }
 0x5f8   : > { %v2106_v51 = vpop.f32.mrf.mxu1 }
 0x5f9   : > { %v2149_v53 = vpop.f32.mrf.mxu0  ;;  %v5022_v51 = vld [vmem:[%s5371_s3 + $0x168] sm:$0xff]  }
 0x5fa   : > { %v2204_v55 = vsel %vm767_vm1, %v2149_v53, 0.0  ;;  %v4700_v56 = vpop.f32.mrf.mxu1  ;;  %v5024_v53 = vld [vmem:[%s5371_s3 + $0x160] sm:$0xff]  }
 0x5fb   : > { %v4705_v57 = vpop.f32.mrf.mxu0  ;;  %v2205_v58 = vadd.f32 %v2204_v55, %v2203_v54  ;;  %v5025_v54 = vld [vmem:[%s5371_s3 + $0x170] sm:$0xff]   ;;  %s5995_s3 = sld [smem:[#allocation19_spill]] }
 0x5fc   : > { %v2195_v59 = vpop.f32.mrf.mxu1 }
 0x5fd   : > { %v2152_v60 = vpop.f32.mrf.mxu0  ;;  %v2206_v0 = vsel %vm767_vm1, %v2195_v59, 0.0 }
 0x5fe   : > { %v2207_v1 = vadd.f32 %v2206_v0, %v2205_v58  ;;  %v4711_v2 = vpop.f32.mrf.mxu1 }
 0x5ff   : > { %v4706_v3 = vpop.f32.mrf.mxu0 }
 0x600   : > { %v2214_v4 = vadd.f32 %v4262_v63, %v2207_v1  ;;  %v2198_v5 = vpop.f32.mrf.mxu1 }
 0x601   : > { %s5997_s15 = scalar_lea.vmem %s5996_s18, %s5995_s3 }
 0x602   : > { %v4712_v6 = vpop.f32.mrf.mxu1  ;;  %v5633_v8 = vadd.f32 %v5076_v7, %v2214_v4 }
 0x604   : > { %v2220_v61 = vsel %vm767_vm1, %v5633_v8, 0.0 }
 0x605   : > { %2221 = vadd.xlane.f32.xlu0 %v2220_v61 }
 0x68e   : > { %v2222_v9 = vpop.xlane.xlu0 %2221 }
 0x68f   : > { %v2223_v11 = vmul.f32 0.03125, %v2222_v9  ;;  %v4348_v9 = vld [vmem:[%s5381_s22 + $0x10] ss:$0 sm:$0xff] }
 0x691   : > { %v2224_v62 = vsub.f32 %v5633_v8, %v2223_v11  ;;  %v4349_v11 = vld [vmem:[%s5381_s22 + $0x11] ss:$0 sm:$0xff] }
 0x693   : > { %v2225_v12 = vmul.f32 %v2224_v62, %v2224_v62  ;;  %v2245_v27 = vmul.f32 %v4265_v26, %v2224_v62 }
 0x695   : > { %v2226_v13 = vsel %vm767_vm1, %v2225_v12, 0.0 }
 0x696   : > { %2227 = vadd.xlane.f32.xlu1 %v2226_v13 }
 0x71f   : > { %v2228_v18 = vpop.xlane.xlu1 %2227 }
 0x720   : > { %v2229_v19 = vmul.f32 0.032258064, %v2228_v18 }
 0x722   : > { %5052 = vrsqrt.f32 %v2229_v19  ;;  %vm2232_vm8 = vcmp.eq.f32.partialorder %v2229_v19, inf  ;;  %v2235_v22 = vand.u32 2147483648, %v2229_v19  ;;  %vm2234_vm9 = vcmp.eq.f32.partialorder %v2229_v19, 0.0 }
 0x72f   : > { %v5053_v20 = vpop.eup %5052 }
 0x730   : > { %v2231_v21 = vmul.f32 %v5053_v20, %v2229_v19  ;;  %v4333_v20 = vld [vmem:[%s5381_s22 + $0xd] ss:$0 sm:$0xff] }
 0x732   : > { %v2233_v23 = vsel %vm2232_vm8, %v2229_v19, %v2231_v21  ;;  %v4332_v19 = vld [vmem:[%s5381_s22 + $0xc] ss:$0 sm:$0xff] }
 0x733   : > { %v2236_v24 = vsel %vm2234_vm9, %v2235_v22, %v2233_v23 }
 0x734   : > { %v2237_v25 = vadd.f32 1e-06, %v2236_v24 }
 0x736   : > { %5054 = vrcp.f32 %v2237_v25 }
 0x743   : > { %v5055_v28 = vpop.eup %5054 }
 0x744   : > { %v2246_v30 = vmul.f32 %v5055_v28, %v2245_v27  ;;  %v4350_v27 = vld [vmem:[%s5381_s22 + $0x12] ss:$0 sm:$0xff]  ;;  %v4351_v28 = vld [vmem:[%s5381_s22 + $0x13] ss:$0 sm:$0xff] }
 0x746   : > { %v2253_v31 = vadd.f32 %v4266_v29, %v2246_v30 }
 0x748   : > { %v2327_v34 = vpack.c.bf16 %v2253_v31, %v2253_v31 }
 0x74a   : > { %4718 = vmatmul.mubr.msk.bf16.vlgmr.msra.gmra.mxu0 %vm767_vm1, %v2327_v34  ;;  %4726 = vmatmul.mubr.msk.bf16.vlgmr.msra.gmra.mxu1 %vm767_vm1, %v2327_v34 }
 0x74b   : > { %4730 = vmatpush3.bf16.msra.mxu0 %v5006_v32  ;;  %4738 = vmatpush3.bf16.msra.mxu1 %v5007_v33 }
 0x74c   : > { %4731 = vmatprep.subr.bf16.mxu0 %v5175_v10  ;;  %4739 = vmatprep.subr.bf16.mxu1 %v5175_v10 }
 0x74d   : > { %4733 = vmatprep.mubr.msk.bf16.mxu0 %vm5176_vm2, %v5175_v10  ;;  %4741 = vmatprep.mubr.msk.bf16.mxu1 %vm5176_vm2, %v5175_v10 }
 0x74f   : > { %4732 = vmatpush3.bf16.msra.mxu0 %v5008_v35  ;;  %4740 = vmatpush3.bf16.msra.mxu1 %v5009_v36 }
 0x750   : > { %4745 = vmatprep.subr.bf16.mxu0 %v5175_v10  ;;  %4753 = vmatprep.subr.bf16.mxu1 %v5175_v10 }
 0x752   : > { %4734 = vmatmul.mubr.msk.bf16.vlgmr.msra.gmra.mxu0 %vm767_vm1, %v2327_v34  ;;  %4742 = vmatmul.mubr.msk.bf16.vlgmr.msra.gmra.mxu1 %vm767_vm1, %v2327_v34 }
 0x753   : > { %4746 = vmatpush3.bf16.msra.mxu0 %v5010_v37  ;;  %4754 = vmatpush3.bf16.msra.mxu1 %v5011_v38 }
 0x754   : > { %4747 = vmatprep.subr.bf16.mxu0 %v5175_v10  ;;  %4755 = vmatprep.subr.bf16.mxu1 %v5175_v10 }
 0x755   : > { %4749 = vmatprep.mubr.msk.bf16.mxu0 %vm5176_vm2, %v5175_v10  ;;  %4757 = vmatprep.mubr.msk.bf16.mxu1 %vm5176_vm2, %v5175_v10 }
 0x757   : > { %4748 = vmatpush3.bf16.msra.mxu0 %v5012_v39  ;;  %4756 = vmatpush3.bf16.msra.mxu1 %v5013_v40 }
 0x758   : > { %4761 = vmatprep.subr.bf16.mxu0 %v5175_v10  ;;  %4769 = vmatprep.subr.bf16.mxu1 %v5175_v10 }
 0x75a   : > { %4750 = vmatmul.mubr.msk.bf16.vlgmr.msra.gmra.mxu0 %vm767_vm1, %v2328_v42  ;;  %4758 = vmatmul.mubr.msk.bf16.vlgmr.msra.gmra.mxu1 %vm767_vm1, %v2328_v42 }
 0x75b   : > { %4762 = vmatpush3.bf16.msra.mxu0 %v5014_v43  ;;  %4770 = vmatpush3.bf16.msra.mxu1 %v5015_v44 }
 0x75c   : > { %4763 = vmatprep.subr.bf16.mxu0 %v5175_v10  ;;  %4771 = vmatprep.subr.bf16.mxu1 %v5175_v10 }
 0x75d   : > { %4765 = vmatprep.mubr.msk.bf16.mxu0 %vm5176_vm2, %v5175_v10  ;;  %4773 = vmatprep.mubr.msk.bf16.mxu1 %vm5176_vm2, %v5175_v10 }
 0x75f   : > { %4764 = vmatpush3.bf16.msra.mxu0 %v5016_v45  ;;  %4772 = vmatpush3.bf16.msra.mxu1 %v5017_v46 }
 0x760   : > { %4777 = vmatprep.subr.bf16.mxu0 %v5175_v10  ;;  %4785 = vmatprep.subr.bf16.mxu1 %v5175_v10 }
 0x762   : > { %4766 = vmatmul.mubr.msk.bf16.vlgmr.msra.gmra.mxu0 %vm767_vm1, %v2328_v42  ;;  %4774 = vmatmul.mubr.msk.bf16.vlgmr.msra.gmra.mxu1 %vm767_vm1, %v2328_v42 }
 0x763   : > { %4781 = vmatprep.mubr.msk.bf16.mxu0 %vm5176_vm2, %v5175_v10  ;;  %4789 = vmatprep.mubr.msk.bf16.mxu1 %vm5176_vm2, %v5175_v10 }
 0x764   : > { %4778 = vmatpush3.bf16.msra.mxu0 %v5018_v47  ;;  %4786 = vmatpush3.bf16.msra.mxu1 %v5019_v48 }
 0x765   : > { %4779 = vmatprep.subr.bf16.mxu0 %v5175_v10  ;;  %4787 = vmatprep.subr.bf16.mxu1 %v5175_v10 }
 0x768   : > { %4780 = vmatpush3.bf16.msra.mxu0 %v5020_v49  ;;  %4788 = vmatpush3.bf16.msra.mxu1 %v5021_v50 }
 0x769   : > { %4793 = vmatprep.subr.bf16.mxu0 %v5175_v10  ;;  %4801 = vmatprep.subr.bf16.mxu1 %v5175_v10 }
 0x76b   : > { %4782 = vmatmul.mubr.msk.bf16.vlgmr.msra.gmra.mxu0 %vm767_vm1, %v2328_v42  ;;  %4790 = vmatmul.mubr.msk.bf16.vlgmr.msra.gmra.mxu1 %vm767_vm1, %v2328_v42 }
 0x76c   : > { %4794 = vmatpush3.bf16.msra.mxu0 %v5022_v51  ;;  %4797 = vmatprep.mubr.msk.bf16.mxu0 %vm5176_vm2, %v5175_v10 }
 0x76d   : > { %4795 = vmatprep.subr.bf16.mxu0 %v5175_v10  ;;  %4802 = vmatpush3.bf16.msra.mxu1 %v5023_v52 }
 0x76e   : > { %4805 = vmatprep.mubr.msk.bf16.mxu1 %vm5176_vm2, %v5175_v10  ;;  %4803 = vmatprep.subr.bf16.mxu1 %v5175_v10 }
 0x770   : > { %4796 = vmatpush3.bf16.msra.mxu0 %v5024_v53  ;;  %v4364_v53 = vld [vmem:[%s5381_s22 + $0x14] ss:$0 sm:$0xff] }
 0x771   : > { %4809 = vmatprep.subr.bf16.mxu0 %v5175_v10  ;;  %4804 = vmatpush3.bf16.msra.mxu1 %v5025_v54 }
 0x772   : > { %4815 = vmatprep.subr.bf16.mxu1 %v5175_v10 }
 0x773   : > { %4798 = vmatmul.mubr.msk.bf16.vlgmr.msra.gmra.mxu0 %vm767_vm1, %v2328_v42 }
 0x774   : > { %4811 = vmatprep.mubr.msk.bf16.mxu0 %vm5176_vm2, %v5175_v10  ;;  %4806 = vmatmul.mubr.msk.bf16.vlgmr.msra.gmra.mxu1 %vm767_vm1, %v2328_v42  ;;  %v4335_v42 = vld [vmem:[%s5381_s22 + $0xf] ss:$0 sm:$0xff] }
 0x775   : > { %4817 = vmatprep.mubr.msk.bf16.mxu1 %vm5176_vm2, %v5175_v10 }
 0x80a   : > { %v2402_v55 = vpop.f32.mrf.mxu0  ;;  %v2454_v56 = vpop.f32.mrf.mxu1 }
 0x80b   : > { %v2403_v29 = vadd.f32 %v4332_v19, %v2402_v55  ;;  %v2455_v30 = vadd.f32 %v4333_v20, %v2454_v56  ;;  %v4365_v55 = vld [vmem:[%s5381_s22 + $0x15] ss:$0 sm:$0xff]  ;;  %v5177_v19 = vmov 0  }
 0x80c   : > { %v4719_v57 = vpop.f32.mrf.mxu0  ;;  %v4727_v58 = vpop.f32.mrf.mxu1 }
 0x80d   : > { %v3031_v37 = vpack.c.bf16 %v2403_v29, %v2403_v29  ;;  %v3032_v38 = vpack.c.bf16 %v2455_v30, %v2455_v30 }
 0x80e   : > { %v2405_v59 = vpop.f32.mrf.mxu0  ;;  %v2457_v60 = vpop.f32.mrf.mxu1 }
 0x810   : > { %v4720_v63 = vpop.f32.mrf.mxu0  ;;  %v4728_v0 = vpop.f32.mrf.mxu1 }
 0x812   : > { %v2506_v1 = vpop.f32.mrf.mxu0  ;;  %v2558_v2 = vpop.f32.mrf.mxu1 }
 0x813   : > { %v2507_v49 = vadd.f32 %v4334_v41, %v2506_v1  ;;  %v2559_v50 = vadd.f32 %v4335_v42, %v2558_v2 }
 0x814   : > { %v4735_v3 = vpop.f32.mrf.mxu0  ;;  %v4743_v4 = vpop.f32.mrf.mxu1 }
 0x815   : > { %v3033_v51 = vpack.c.bf16 %v2507_v49, %v2507_v49  ;;  %v3034_v52 = vpack.c.bf16 %v2559_v50, %v2559_v50 }
 0x816   : > { %v2509_v5 = vpop.f32.mrf.mxu0  ;;  %v2561_v6 = vpop.f32.mrf.mxu1 }
 0x818   : > { %v4736_v7 = vpop.f32.mrf.mxu0  ;;  %v4744_v61 = vpop.f32.mrf.mxu1 }
 0x81a   : > { %v2637_v62 = vpop.f32.mrf.mxu0  ;;  %v2689_v12 = vpop.f32.mrf.mxu1 }
 0x81b   : > { %v2638_v13 = vadd.f32 %v4348_v9, %v2637_v62  ;;  %v2690_v14 = vadd.f32 %v4349_v11, %v2689_v12 }
 0x81c   : > { %v4751_v15 = vpop.f32.mrf.mxu0  ;;  %v4759_v16 = vpop.f32.mrf.mxu1 }
 0x81d   : > { %v3035_v17 = vpack.c.bf16 %v2638_v13, %v2638_v13  ;;  %v3036_v18 = vpack.c.bf16 %v2690_v14, %v2690_v14  ;;  %v3229_v15 = vlaneseq  ;;  %v764_v16 = vld [vmem:[%s5997_s15] sm:$0x1] }
 0x81e   : > { %v2640_v21 = vpop.f32.mrf.mxu0  ;;  %v2692_v22 = vpop.f32.mrf.mxu1  ;;  %vm3227_vm10 = vcmp.gt.f32.partialorder %v764_v16, 0.0 }
 0x81f   : > { %v3043_v23 = vsel %vm1580_vm5, %v3035_v17, 0  ;;  %v3089_v24 = vsel %vm1580_vm5, %v3036_v18, 0  ;;  %v3230_v17 = vshrl.u32 %v3229_v15, 7  ;;  %v3228_v20 = vsel %vm3227_vm10, 1, %v5177_v19 }
 0x820   : > { %v4752_v25 = vpop.f32.mrf.mxu0  ;;  %v4760_v26 = vpop.f32.mrf.mxu1  ;;  %4810 = vmatpush3.bf16.xpose.msra.mxu0 %v3043_v23  ;;  %4816 = vmatpush3.bf16.xpose.msra.mxu1 %v3089_v24 }
 0x821   : > { %4821 = vmatprep.subr.bf16.mxu0 %v5175_v10  ;;  %4827 = vmatprep.subr.bf16.mxu1 %v5175_v10  ;;  %v3231_v18 = vsub.s32 0, %v3230_v17 }
 0x822   : > { %v2741_v31 = vpop.f32.mrf.mxu0  ;;  %v2793_v32 = vpop.f32.mrf.mxu1 }
 0x823   : > { %v2742_v33 = vadd.f32 %v4350_v27, %v2741_v31  ;;  %v2794_v34 = vadd.f32 %v4351_v28, %v2793_v32  ;;  %v3232_v21 = vrot.slane %v3228_v20, %v3231_v18 }
 0x824   : > { %v4767_v35 = vpop.f32.mrf.mxu0  ;;  %v4775_v36 = vpop.f32.mrf.mxu1 }
 0x825   : > { %v3037_v39 = vpack.c.bf16 %v2742_v33, %v2742_v33  ;;  %v3038_v40 = vpack.c.bf16 %v2794_v34, %v2794_v34  ;;  %vm3233_vm11 = vcmp.eq.s32.totalorder %v3232_v21, 1 }
 0x826   : > { %v2744_v43 = vpop.f32.mrf.mxu0  ;;  %v2796_v44 = vpop.f32.mrf.mxu1 }
 0x827   : > { %v3135_v45 = vsel %vm1580_vm5, %v3037_v39, 0  ;;  %v3181_v46 = vsel %vm1580_vm5, %v3038_v40, 0  ;;  %4812 = vmatmul.mubr.msk.bf16.vlgmr.msra.gmra.mxu0 %vm1580_vm5, %v3031_v37  ;;  %4818 = vmatmul.mubr.msk.bf16.vlgmr.msra.gmra.mxu1 %vm1580_vm5, %v3032_v38 }
 0x828   : > { %v4768_v47 = vpop.f32.mrf.mxu0  ;;  %v4776_v48 = vpop.f32.mrf.mxu1  ;;  %4822 = vmatpush3.bf16.xpose.msra.mxu0 %v3135_v45  ;;  %4828 = vmatpush3.bf16.xpose.msra.mxu1 %v3181_v46 }
 0x829   : > { %4823 = vmatprep.mubr.msk.bf16.mxu0 %vm5176_vm2, %v5175_v10  ;;  %4829 = vmatprep.mubr.msk.bf16.mxu1 %vm5176_vm2, %v5175_v10 }
 0x82a   : > { %4833 = vmatprep.subr.bf16.mxu0 %v5175_v10  ;;  %4839 = vmatprep.subr.bf16.mxu1 %v5175_v10 }
 0x82b   : > { %v2869_v54 = vpop.f32.mrf.mxu0  ;;  %v2921_v58 = vpop.f32.mrf.mxu1 }
 0x82c   : > { %v2870_v56 = vadd.f32 %v4364_v53, %v2869_v54  ;;  %v2922_v60 = vadd.f32 %v4365_v55, %v2921_v58 }
 0x82d   : > { %v4783_v57 = vpop.f32.mrf.mxu0  ;;  %v4791_v0 = vpop.f32.mrf.mxu1 }
 0x82e   : > { %v3286_v59 = vpack.c.bf16 %v2870_v56, %v2870_v56  ;;  %v3287_v2 = vpack.c.bf16 %v2922_v60, %v2922_v60 }
 0x82f   : > { %4824 = vmatmul.mubr.msk.bf16.vlgmr.msra.gmra.mxu0 %vm1580_vm5, %v3033_v51  ;;  %4830 = vmatmul.mubr.msk.bf16.vlgmr.msra.gmra.mxu1 %vm1580_vm5, %v3034_v52  ;;  %v2872_v63 = vpop.f32.mrf.mxu0  ;;  %v2924_v4 = vpop.f32.mrf.mxu1 }
 0x830   : > { %4835 = vmatprep.mubr.msk.bf16.mxu0 %vm5176_vm2, %v5175_v10  ;;  %4841 = vmatprep.mubr.msk.bf16.mxu1 %vm5176_vm2, %v5175_v10  ;;  %v3294_v1 = vsel %vm1831_vm6, %v3286_v59, 0  ;;  %v3340_v5 = vsel %vm1831_vm6, %v3287_v2, 0 }
 0x831   : > { %v4784_v3 = vpop.f32.mrf.mxu0  ;;  %4834 = vmatpush3.bf16.msra.mxu0 %v3294_v1  ;;  %v4792_v6 = vpop.f32.mrf.mxu1  ;;  %4840 = vmatpush3.bf16.msra.mxu1 %v3340_v5 }
 0x832   : > { %4845 = vmatprep.subr.bf16.mxu0 %v5175_v10  ;;  %4851 = vmatprep.subr.bf16.mxu1 %v5175_v10 }
 0x833   : > { %v5763_v7 = vpop.f32.mrf.mxu0 }
 0x834   : > { %v5766_v9 = vpop.f32.mrf.mxu1 }
 0x835   : > { %v4799_v61 = vpop.f32.mrf.mxu0 }
 0x836   : > { %v4807_v62 = vpop.f32.mrf.mxu1 }
 0x837   : > { %v2976_v11 = vpop.f32.mrf.mxu0 }
 0x838   : > { %v3028_v13 = vpop.f32.mrf.mxu1 }
 0x839   : > { %v4800_v12 = vpop.f32.mrf.mxu0 }
 0x83a   : > { %v4808_v14 = vpop.f32.mrf.mxu1  ;;  %v4367_v12 = vld [vmem:[%s5381_s22 + $0x17] ss:$0 sm:$0xff] }
 0x83b   : > { %v4366_v14 = vld [vmem:[%s5381_s22 + $0x16] ss:$0 sm:$0xff]  ;;  %v3026_v16 = vadd.f32 %v4367_v12, %v5766_v9 }
 0x83c   : > { %v2974_v17 = vadd.f32 %v4366_v14, %v5763_v7  ;;  %v4316_v9 = vld [vmem:[%s5376_s0 + $0x14] sm:$0xf] }
 0x83d   : > { %v3289_v20 = vpack.c.bf16 %v3026_v16, %v3026_v16 }
 0x8e7   : > { %v3079_v22 = vpop.f32.mrf.mxu0  ;;  %v3125_v23 = vpop.f32.mrf.mxu1 }
 0x8e8   : > { %v3223_v24 = vmul.f32 0.35355338, %v3079_v22  ;;  %v3224_v25 = vmul.f32 0.35355338, %v3125_v23  ;;  %v3288_v22 = vpack.c.bf16 %v2974_v17, %v2974_v17  ;;  %v4392_v17 = vld [vmem:[%s5387_s19 + $0x1] ss:$0 sm:$0xff] }
 0x8e9   : > { %v4813_v26 = vpop.f32.mrf.mxu0  ;;  %v4819_v27 = vpop.f32.mrf.mxu1 }
 0x8ea   : > { %v3235_v28 = vsel %vm3233_vm11, %v3224_v25, -1e+09  ;;  %v3234_v29 = vsel %vm3233_vm11, %v3223_v24, -1e+09  ;;  %v3432_v26 = vsel %vm1831_vm6, %v3289_v20, 0  ;;  %v3386_v27 = vsel %vm1831_vm6, %v3288_v22, 0 }
 0x8eb   : > { %v3082_v30 = vpop.f32.mrf.mxu0  ;;  %v3128_v31 = vpop.f32.mrf.mxu1  ;;  %v3241_v32 = vsel %vm1580_vm5, %v3235_v28, -inf  ;;  %v3238_v33 = vsel %vm1580_vm5, %v3234_v29, -inf }
 0x8ec   : > { %3242 = vmax.xlane.f32.xlu1 %v3241_v32  ;;  %3239 = vmax.xlane.f32.xlu0 %v3238_v33  ;;  %v4315_v30 = vld [vmem:[%s5376_s0 + $0x10] sm:$0xf]  ;;  %v3528_v33 = vsel %vm1831_vm6, %v4316_v9, 0 }
 0x8ed   : > { %v4814_v34 = vpop.f32.mrf.mxu0  ;;  %v4820_v35 = vpop.f32.mrf.mxu1 }
 0x8ee   : > { %v3482_v35 = vsel %vm1831_vm6, %v4315_v30, 0  ;;  %v5026_v30 = vld [vmem:[%s5393_s30 + $0x8] sm:$0xff]  }
 0x8ef   : > { %v3171_v36 = vpop.f32.mrf.mxu0  ;;  %v3217_v37 = vpop.f32.mrf.mxu1 }
 0x8f0   : > { %v3225_v38 = vmul.f32 0.35355338, %v3171_v36  ;;  %v3226_v39 = vmul.f32 0.35355338, %v3217_v37  ;;  %v4318_v36 = vld [vmem:[%s5376_s0 + $0x1c] sm:$0xf] }
 0x8f1   : > { %v4825_v40 = vpop.f32.mrf.mxu0  ;;  %v4831_v41 = vpop.f32.mrf.mxu1  ;;  %v4317_v37 = vld [vmem:[%s5376_s0 + $0x18] sm:$0xf]  ;;  %s5998_s0 = scalar_lea.vmem %s5930_s9, %s5344_s20 }
 0x8f2   : > { %v3237_v42 = vsel %vm3233_vm11, %v3226_v39, -1e+09  ;;  %v3236_v43 = vsel %vm3233_vm11, %v3225_v38, -1e+09  ;;  %v3620_v41 = vsel %vm1831_vm6, %v4318_v36, 0 }
 0x8f3   : > { %v3174_v44 = vpop.f32.mrf.mxu0  ;;  %v3220_v45 = vpop.f32.mrf.mxu1  ;;  %v3247_v46 = vsel %vm1580_vm5, %v3237_v42, -inf  ;;  %v3244_v47 = vsel %vm1580_vm5, %v3236_v43, -inf }
 0x8f4   : > { %3248 = vmax.xlane.f32.xlu1 %v3247_v46  ;;  %3245 = vmax.xlane.f32.xlu0 %v3244_v47  ;;  %v3574_v44 = vsel %vm1831_vm6, %v4317_v37, 0 }
 0x8f5   : > { %v4826_v48 = vpop.f32.mrf.mxu0  ;;  %v4832_v49 = vpop.f32.mrf.mxu1 }
 0x975   : > { %v3243_v50 = vpop.xlane.xlu1 %3242  ;;  %v3240_v51 = vpop.xlane.xlu0 %3239 }
 0x976   : > { %v3251_v52 = vsub.f32 %v3235_v28, %v3243_v50  ;;  %v3250_v53 = vsub.f32 %v3234_v29, %v3240_v51 }
 0x978   : > { %v3256_v54 = vmul.f32 1.442695, %v3251_v52  ;;  %v3254_v55 = vmul.f32 1.442695, %v3250_v53 }
 0x97a   : > { %5056 = vpow2.f32 %v3256_v54 }
 0x97b   : > { %5058 = vpow2.f32 %v3254_v55 }
 0x97d   : > { %v3249_v56 = vpop.xlane.xlu1 %3248  ;;  %v3246_v57 = vpop.xlane.xlu0 %3245 }
 0x97e   : > { %v3253_v58 = vsub.f32 %v3237_v42, %v3249_v56  ;;  %v3252_v59 = vsub.f32 %v3236_v43, %v3246_v57 }
 0x980   : > { %v3260_v60 = vmul.f32 1.442695, %v3253_v58  ;;  %v3258_v63 = vmul.f32 1.442695, %v3252_v59 }
 0x982   : > { %5060 = vpow2.f32 %v3260_v60 }
 0x983   : > { %5062 = vpow2.f32 %v3258_v63 }
 0x987   : > { %v5057_v0 = vpop.eup %5056 }
 0x988   : > { %v5059_v1 = vpop.eup %5058  ;;  %v3265_v2 = vsel %vm1580_vm5, %v5057_v0, 0.0 }
 0x989   : > { %3266 = vadd.xlane.f32.xlu1 %v3265_v2  ;;  %v3262_v3 = vsel %vm1580_vm5, %v5059_v1, 0.0 }
 0x98a   : > { %3263 = vadd.xlane.f32.xlu0 %v3262_v3 }
 0x98f   : > { %v5061_v4 = vpop.eup %5060 }
 0x990   : > { %v5063_v5 = vpop.eup %5062  ;;  %v3271_v6 = vsel %vm1580_vm5, %v5061_v4, 0.0 }
 0x991   : > { %3272 = vadd.xlane.f32.xlu1 %v3271_v6  ;;  %v3268_v61 = vsel %vm1580_vm5, %v5063_v5, 0.0 }
 0x992   : > { %3269 = vadd.xlane.f32.xlu0 %v3268_v61 }
 0xa12   : > { %v3267_v11 = vpop.xlane.xlu1 %3266 }
 0xa13   : > { %5064 = vrcp.f32 %v3267_v11  ;;  %v3264_v62 = vpop.xlane.xlu0 %3263 }
 0xa14   : > { %5066 = vrcp.f32 %v3264_v62 }
 0xa1a   : > { %v3273_v13 = vpop.xlane.xlu1 %3272 }
 0xa1b   : > { %5068 = vrcp.f32 %v3273_v13  ;;  %v3270_v15 = vpop.xlane.xlu0 %3269 }
 0xa1c   : > { %5070 = vrcp.f32 %v3270_v15 }
 0xa20   : > { %v5065_v18 = vpop.eup %5064 }
 0xa21   : > { %v5067_v19 = vpop.eup %5066  ;;  %v3279_v21 = vmul.f32 %v5065_v18, %v5057_v0 }
 0xa22   : > { %v3278_v23 = vmul.f32 %v5067_v19, %v5059_v1 }
 0xa23   : > { %v3283_v24 = vpack.c.bf16 %v3279_v21, %v3279_v21 }
 0xa24   : > { %v3282_v25 = vpack.c.bf16 %v3278_v23, %v3278_v23 }
 0xa25   : > { %4842 = vmatmul.mubr.msk.bf16.vlgmr.msra.gmra.mxu1 %vm1580_vm5, %v3283_v24 }
 0xa26   : > { %4836 = vmatmul.mubr.msk.bf16.vlgmr.msra.gmra.mxu0 %vm1580_vm5, %v3282_v25  ;;  %4852 = vmatpush3.bf16.msra.mxu1 %v3432_v26 }
 0xa27   : > { %4846 = vmatpush3.bf16.msra.mxu0 %v3386_v27  ;;  %4847 = vmatprep.mubr.msk.bf16.mxu0 %vm5176_vm2, %v5175_v10 }
 0xa28   : > { %v5069_v7 = vpop.eup %5068  ;;  %4853 = vmatprep.mubr.msk.bf16.mxu1 %vm5176_vm2, %v5175_v10  ;;  %4857 = vmatprep.subr.bf16.mxu0 %v5175_v10 }
 0xa29   : > { %v5071_v28 = vpop.eup %5070  ;;  %v3281_v29 = vmul.f32 %v5069_v7, %v5061_v4  ;;  %4863 = vmatprep.subr.bf16.mxu1 %v5175_v10 }
 0xa2a   : > { %v3280_v31 = vmul.f32 %v5071_v28, %v5063_v5 }
 0xa2b   : > { %v3285_v32 = vpack.c.bf16 %v3281_v29, %v3281_v29 }
 0xa2c   : > { %v3284_v34 = vpack.c.bf16 %v3280_v31, %v3280_v31  ;;  %v5027_v31 = vld [vmem:[%s5393_s30] sm:$0xff]  }
 0xa2d   : > { %4854 = vmatmul.mubr.msk.bf16.vlgmr.msra.gmra.mxu1 %vm1580_vm5, %v3285_v32  ;;  %v5028_v32 = vld [vmem:[%s5402_s17 + $0x18] sm:$0xff]  }
 0xa2e   : > { %4848 = vmatmul.mubr.msk.bf16.vlgmr.msra.gmra.mxu0 %vm1580_vm5, %v3284_v34  ;;  %4864 = vmatpush3.bf16.msra.mxu1 %v3528_v33 }
 0xa2f   : > { %4858 = vmatpush3.bf16.msra.mxu0 %v3482_v35  ;;  %4859 = vmatprep.mubr.msk.bf16.mxu0 %vm5176_vm2, %v5175_v10 }
 0xa30   : > { %4865 = vmatprep.mubr.msk.bf16.mxu1 %vm5176_vm2, %v5175_v10  ;;  %4869 = vmatprep.subr.bf16.mxu0 %v5175_v10 }
 0xa31   : > { %4875 = vmatprep.subr.bf16.mxu1 %v5175_v10 }
 0xae5   : > { %v3376_v38 = vpop.f32.mrf.mxu1 }
 0xae6   : > { %v3330_v39 = vpop.f32.mrf.mxu0  ;;  %v3475_v40 = vpack.c.bf16 %v3376_v38, %v3376_v38 }
 0xae7   : > { %v3474_v42 = vpack.c.bf16 %v3330_v39, %v3330_v39  ;;  %v4843_v43 = vpop.f32.mrf.mxu1 }
 0xae8   : > { %v4837_v45 = vpop.f32.mrf.mxu0  ;;  %4866 = vmatmul.mubr.msk.bf16.vlgmr.msra.gmra.mxu1 %vm1580_vm5, %v3475_v40 }
 0xae9   : > { %4860 = vmatmul.mubr.msk.bf16.vlgmr.msra.gmra.mxu0 %vm1580_vm5, %v3474_v42  ;;  %v3379_v46 = vpop.f32.mrf.mxu1  ;;  %4876 = vmatpush3.bf16.msra.mxu1 %v3620_v41  ;;  %v4395_v41 = vld [vmem:[%s5412_s13 + $0x2] ss:$0 sm:$0xff] }
 0xaea   : > { %v3333_v47 = vpop.f32.mrf.mxu0  ;;  %4870 = vmatpush3.bf16.msra.mxu0 %v3574_v44  ;;  %4871 = vmatprep.mubr.msk.bf16.mxu0 %vm5176_vm2, %v5175_v10  ;;  %v4396_v44 = vld [vmem:[%s5417_s23 + $0x2] ss:$0 sm:$0xff] }
 0xaeb   : > { %v4844_v48 = vpop.f32.mrf.mxu1  ;;  %4877 = vmatprep.mubr.msk.bf16.mxu1 %vm5176_vm2, %v5175_v10  ;;  %4881 = vmatprep.subr.bf16.mxu0 %v5175_v10 }
 0xaec   : > { %v4838_v49 = vpop.f32.mrf.mxu0  ;;  %4889 = vmatprep.subr.bf16.mxu1 %v5175_v10  ;;  %v5030_v48 = vld [vmem:[%s5402_s17 + $0x8] sm:$0xff]  }
 0xaed   : > { %v3468_v50 = vpop.f32.mrf.mxu1  ;;  %v5031_v49 = vld [vmem:[%s5402_s17] sm:$0xff]  }
 0xaee   : > { %v3422_v51 = vpop.f32.mrf.mxu0  ;;  %v3477_v52 = vpack.c.bf16 %v3468_v50, %v3468_v50  ;;  %v4397_v50 = vld [vmem:[%s5998_s0] ss:$0 sm:$0xff] }
 0xaef   : > { %v3476_v53 = vpack.c.bf16 %v3422_v51, %v3422_v51  ;;  %v4855_v54 = vpop.f32.mrf.mxu1 }
 0xaf0   : > { %v4849_v55 = vpop.f32.mrf.mxu0  ;;  %4878 = vmatmul.mubr.msk.bf16.vlgmr.msra.gmra.mxu1 %vm1580_vm5, %v3477_v52 }
 0xaf1   : > { %4872 = vmatmul.mubr.msk.bf16.vlgmr.msra.gmra.mxu0 %vm1580_vm5, %v3476_v53  ;;  %v3471_v56 = vpop.f32.mrf.mxu1  ;;  %4897 = vmatprep.mubr.msk.bf16.mxu1 %vm5176_vm2, %v5175_v10 }
 0xaf2   : > { %v3425_v57 = vpop.f32.mrf.mxu0  ;;  %4885 = vmatprep.mubr.msk.bf16.mxu0 %vm5176_vm2, %v5175_v10  ;;  %4882 = vmatpush3.bf16.msra.mxu0 %v5026_v30 }
 0xaf3   : > { %v4856_v58 = vpop.f32.mrf.mxu1  ;;  %4883 = vmatprep.subr.bf16.mxu0 %v5175_v10  ;;  %4890 = vmatpush3.bf16.msra.mxu1 %v5028_v32 }
 0xaf4   : > { %v4850_v59 = vpop.f32.mrf.mxu0  ;;  %4891 = vmatprep.subr.bf16.mxu1 %v5175_v10 }
 0xaf6   : > { %4884 = vmatpush3.bf16.msra.mxu0 %v5027_v31 }
 0xba8   : > { %v3564_v60 = vpop.f32.mrf.mxu1 }
 0xba9   : > { %v3518_v63 = vpop.f32.mrf.mxu0  ;;  %v3663_v5 = vsel %vm767_vm1, %v3564_v60, 0.0 }
 0xbaa   : > { %v4867_v0 = vpop.f32.mrf.mxu1  ;;  %v3662_v4 = vsel %vm767_vm1, %v3518_v63, 0.0 }
 0xbab   : > { %v4861_v1 = vpop.f32.mrf.mxu0  ;;  %v3664_v62 = vadd.f32 %v3663_v5, %v3662_v4 }
 0xbac   : > { %v3567_v2 = vpop.f32.mrf.mxu1 }
 0xbad   : > { %v3521_v3 = vpop.f32.mrf.mxu0 }
 0xbae   : > { %v4868_v6 = vpop.f32.mrf.mxu1 }
 0xbaf   : > { %v4862_v61 = vpop.f32.mrf.mxu0 }
 0xbb0   : > { %v3656_v11 = vpop.f32.mrf.mxu1 }
 0xbb1   : > { %v3610_v12 = vpop.f32.mrf.mxu0  ;;  %v3667_v18 = vsel %vm767_vm1, %v3656_v11, 0.0 }
 0xbb2   : > { %v3665_v13 = vsel %vm767_vm1, %v3610_v12, 0.0  ;;  %v4879_v14 = vpop.f32.mrf.mxu1 }
 0xbb3   : > { %v3666_v15 = vadd.f32 %v3665_v13, %v3664_v62  ;;  %v4873_v16 = vpop.f32.mrf.mxu0 }
 0xbb4   : > { %v3659_v19 = vpop.f32.mrf.mxu1 }
 0xbb5   : > { %v3668_v20 = vadd.f32 %v3667_v18, %v3666_v15  ;;  %v3613_v21 = vpop.f32.mrf.mxu0 }
 0xbb6   : > { %v4880_v22 = vpop.f32.mrf.mxu1 }
 0xbb7   : > { %v3675_v23 = vadd.f32 %v4392_v17, %v3668_v20  ;;  %v4874_v24 = vpop.f32.mrf.mxu0 }
 0xbb9   : > { %v3676_v25 = vadd.f32 %v3675_v23, %v5633_v8  ;;  %v5029_v8 = vld [vmem:[%s5402_s17 + $0x10] sm:$0xff]   ;;  %s5999_s17 = sld [smem:[#allocation9_spill]] }
 0xbba   : > { %4892 = vmatpush3.bf16.msra.mxu1 %v5029_v8 }
 0xbbb   : > { %v3681_v26 = vsel %vm767_vm1, %v3676_v25, 0.0  ;;  %4893 = vmatprep.subr.bf16.mxu1 %v5175_v10 }
 0xbbc   : > { %3682 = vadd.xlane.f32.xlu0 %v3681_v26 }
 0xbbe   : > { %4894 = vmatpush3.bf16.msra.mxu1 %v5030_v48 }
 0xbbf   : > { %4895 = vmatprep.subr.bf16.mxu1 %v5175_v10  ;;  %v4406_v10 = vld [vmem:[%s744_s14] ss:$0 sm:$0xff]  ;;  %p4407_p1 = scmp.ne.s32.totalorder %s5999_s17, 1 }
 0xbc0   : > { %s6000_s13 = sld [smem:[#allocation29_spill]] (!%p4407_p1) }
 0xbc1   : > { %s6001_s23 = sld [smem:[#allocation30_spill]] (!%p4407_p1) }
 0xbc2   : > { %4896 = vmatpush3.bf16.msra.mxu1 %v5031_v49 }
 0xc45   : > { %v3683_v27 = vpop.xlane.xlu0 %3682 }
 0xc46   : > { %v3684_v7 = vmul.f32 0.03125, %v3683_v27 }
 0xc48   : > { %v3685_v9 = vsub.f32 %v3676_v25, %v3684_v7 }
 0xc4a   : > { %v3686_v28 = vmul.f32 %v3685_v9, %v3685_v9  ;;  %v3706_v42 = vmul.f32 %v4395_v41, %v3685_v9 }
 0xc4c   : > { %v3687_v29 = vsel %vm767_vm1, %v3686_v28, 0.0 }
 0xc4d   : > { %3688 = vadd.xlane.f32.xlu1 %v3687_v29 }
 0xcd6   : > { %v3689_v33 = vpop.xlane.xlu1 %3688 }
 0xcd7   : > { %v3690_v34 = vmul.f32 0.032258064, %v3689_v33 }
 0xcd9   : > { %5072 = vrsqrt.f32 %v3690_v34  ;;  %vm3693_vm12 = vcmp.eq.f32.partialorder %v3690_v34, inf  ;;  %v3696_v37 = vand.u32 2147483648, %v3690_v34  ;;  %vm3695_vm13 = vcmp.eq.f32.partialorder %v3690_v34, 0.0 }
 0xce6   : > { %v5073_v35 = vpop.eup %5072 }
 0xce7   : > { %v3692_v36 = vmul.f32 %v5073_v35, %v3690_v34 }
 0xce9   : > { %v3694_v38 = vsel %vm3693_vm12, %v3690_v34, %v3692_v36 }
 0xcea   : > { %v3697_v39 = vsel %vm3695_vm13, %v3696_v37, %v3694_v38 }
 0xceb   : > { %v3698_v40 = vadd.f32 1e-06, %v3697_v39 }
 0xced   : > { %5074 = vrcp.f32 %v3698_v40 }
 0xcfa   : > { %v5075_v43 = vpop.eup %5074 }
 0xcfb   : > { %v3707_v45 = vmul.f32 %v5075_v43, %v3706_v42 }
 0xcfd   : > { %v3714_v46 = vadd.f32 %v4396_v44, %v3707_v45 }
 0xcff   : > { %v3715_v47 = vpack.c.bf16 %v3714_v46, %v3714_v46 }
 0xd01   : > { %4886 = vmatmul.mubr.msk.bf16.vlgmr.msra.gmra.mxu0 %vm767_vm1, %v3715_v47 }
 0xdc1   : > { %v3776_v51 = vpop.f32.mrf.mxu0 }
 0xdc2   : > { %v3777_v52 = vadd.f32 %v4397_v50, %v3776_v51 }
 0xdc3   : > { %v4887_v53 = vpop.f32.mrf.mxu0 }
 0xdc4   : > { %v3782_v54 = vmax.f32 %v3777_v52, 0.0 }
 0xdc5   : > { %v3779_v55 = vpop.f32.mrf.mxu0 }
 0xdc6   : > { %v3783_v56 = vpack.c.bf16 %v3782_v54, %v3782_v54 }
 0xdc7   : > { %v4888_v57 = vpop.f32.mrf.mxu0 }
 0xdc8   : > { %4898 = vmatmul.mubr.msk.bf16.vlgmr.msra.gmra.mxu1 %vm3816_vm14, %v3783_v56 }
 0xe88   : > { %v3854_v58 = vpop.f32.mrf.mxu1 }
 0xe89   : > { %v3860_v59 = vadd.f32 %v3854_v58, %v3676_v25 }
 0xe8a   : > { %v4899_v60 = vpop.f32.mrf.mxu1  ;;  %3873 = sbr.rel (%p4407_p1) target bundleno = 4052 (0xfd4), region = 92 }
 0xe8b   : > { %v3868_v63 = vadd.f32 %v4406_v10, %v3860_v59 }
 0xe8c   : > { %v3857_v0 = vpop.f32.mrf.mxu1 }
 0xe8d   : > { %3869 = vst.msk [vmem:[#allocation2] sm:$0xff] %vm767_vm1, %v3868_v63 }
 0xe8e   : > { %v4900_v1 = vpop.f32.mrf.mxu1 }
 0xe8f   : > { %v3876_v2 = vsel %vm767_vm1, %v3868_v63, 0.0  ;;  %v4408_v18 = vld [vmem:[%s6000_s13] ss:$0 sm:$0xff] }
 0xe90   : > { %3877 = vadd.xlane.f32.xlu0 %v3876_v2  ;;  %v4409_v21 = vld [vmem:[%s6001_s23] ss:$0 sm:$0xff] }
 0xf19   : > { %v3878_v3 = vpop.xlane.xlu0 %3877 }
 0xf1a   : > { %v3879_v4 = vmul.f32 0.03125, %v3878_v3 }
 0xf1c   : > { %v3880_v5 = vsub.f32 %v3868_v63, %v3879_v4 }
 0xf1e   : > { %v3881_v6 = vmul.f32 %v3880_v5, %v3880_v5  ;;  %v3901_v19 = vmul.f32 %v4408_v18, %v3880_v5 }
 0xf20   : > { %v3882_v61 = vsel %vm767_vm1, %v3881_v6, 0.0 }
 0xf21   : > { %3883 = vadd.xlane.f32.xlu0 %v3882_v61 }
 0xfaa   : > { %v3884_v11 = vpop.xlane.xlu0 %3883 }
 0xfab   : > { %v3885_v62 = vmul.f32 0.032258064, %v3884_v11 }
 0xfad   : > { %5077 = vrsqrt.f32 %v3885_v62  ;;  %vm3888_vm15 = vcmp.eq.f32.partialorder %v3885_v62, inf  ;;  %v3891_v14 = vand.u32 2147483648, %v3885_v62  ;;  %vm3890_vm0 = vcmp.eq.f32.partialorder %v3885_v62, 0.0 }
 0xfba   : > { %v5078_v12 = vpop.eup %5077 }
 0xfbb   : > { %v3887_v13 = vmul.f32 %v5078_v12, %v3885_v62 }
 0xfbd   : > { %v3889_v15 = vsel %vm3888_vm15, %v3885_v62, %v3887_v13 }
 0xfbe   : > { %v3892_v16 = vsel %vm3890_vm0, %v3891_v14, %v3889_v15 }
 0xfbf   : > { %v3893_v17 = vadd.f32 1e-06, %v3892_v16 }
 0xfc1   : > { %5079 = vrcp.f32 %v3893_v17 }
 0xfce   : > { %v5080_v20 = vpop.eup %5079 }
 0xfcf   : > { %v3902_v22 = vmul.f32 %v5080_v20, %v3901_v19 }
 0xfd1   : > { %v3909_v23 = vadd.f32 %v4409_v21, %v3902_v22 }
 0xfd3   : > { %3910 = vst.msk [vmem:[%s695_s21] sm:$0xff] %vm767_vm1, %v3909_v23 }
 0xfd4 PF: > { %s6002_s4 = sld [smem:[#allocation10_spill]]  ;;  %s3925_s16 = sshll.u32 %s695_s21, 4  ;;  %s3926_s16 = int_to_ptr.vmem [resolvable:$true] %s3925_s16 }
 0xfd5   : > { %s6003_s5 = sld [smem:[#allocation7_spill]]  ;;  %s5081_s22 = scalar_lea.vmem %s3926_s16, 128 }
 0xfd6   : > { %s6005_s27 = sld [smem:[#allocation31_spill]]  ;;  %p5082_p2 = scmp.ne.s32.totalorder %s3926_s16, %s5081_s22 }
 0xfd7   : > { %s5178_s19 = smov [#allocation3]  }
 0xfd8   : > { %p5083_p4 = pnand %p5082_p2, %p5313_p3  ;;  %s5085_s0 = sshll.u32 %s5178_s19, 4  ;;  %s5086_s0 = int_to_ptr.vmem [resolvable:$false] %s5085_s0 }
 0xfd9   : > { %s5087_s30 = scalar_lea.vmem %s5086_s0, 256  ;;  %p5088_p6 = scmp.lt.s32.totalorder %s3926_s16, %s5086_s0 }
 0xfda   : > { %s4411_s7 = sshll.u32 %s6002_s4, 7  ;;  %p5084_p5 = pneg %p5083_p4 }
 0xfdb   : > { %s6007_s18 = sand.u32 1, %s6003_s5   ;;  %p5089_p7 = scmp.lt.s32.totalorder %s5087_s30, %s5081_s22 }
 0xfdc   : > { %s6006_s3 = smov %s6005_s27  ;;  %s3923_s29 = scalar_lea.hbm %s6005_s27, %s4411_s7 }
 0xfdd   : > { %s3912_s15 = scalar_lea.sflag [#allocation4], %s6007_s18  ;;  %p5090_p8 = por %p5089_p7, %p5088_p6 }
 0xfdf   : > { %p5091_p10 = pnand %p5090_p8, %p5084_p5 }
 0xfe1   : > { %5094 = shalt.err (!%p5091_p10)
}
 0xfe2   : > { %s5095_s25 = scalar_lea.hbm %s3923_s29, 128  ;;  %s5099_s17 = scalar_lea.hbm %s6006_s3, 256 }
 0xfe3   : > { %p5096_p11 = scmp.ne.s32.totalorder %s3923_s29, %s5095_s25  ;;  %p5100_p0 = scmp.lt.s32.totalorder %s3923_s29, %s6006_s3 }
 0xfe4   : > { %p5101_p1 = scmp.lt.s32.totalorder %s5099_s17, %s5095_s25 }
 0xfe5   : > { %p5097_p12 = pnand %p5096_p11, %p5313_p3 }
 0xfe6   : > { %p5102_p2 = por %p5101_p1, %p5100_p0 }
 0xfe7   : > { %p5098_p13 = pneg %p5097_p12 }
 0xfe9   : > { %p5103_p4 = pnand %p5102_p2, %p5098_p13 }
 0xfeb   : > { %5106 = shalt.err (!%p5103_p4)
}
 0xfec   : > { %4904 = dma.vmem_to_hbm [thread:$0]  (%p5313_p3), %s3926_s16, 128, %s3923_s29, %s3912_s15  }
 0xfed PF: > { %s6008_s13 = sld [smem:[#allocation13_spill]] }
 0xfee   : > { %s6009_s1 = sld [smem:[#allocation6_spill]] }
 0xff3   : > { %p4910_p5 = scmp.ge.s32.totalorder %s6008_s13, 2 }
 0xff4   : > { %s3937_s23 = sand.u32 1, %s6009_s1  }
 0xff5   : > { %p4907_p6 = pnand %p4910_p5, %p5323_p9  ;;  %s3938_s4 = scalar_lea.sflag [#allocation4], %s3937_s23 }
 0xff7   : > { %p4908_p7 = pneg %p4907_p6 }
 0xff9   : > { %5140 = dma.done.wait (%p4908_p7), %s3938_s4, 128  }
 0xffa   : > { %5142 = vsyncadd (%p4908_p7), %s3938_s4, 4294967168  ;;  %s29_s28 = sadd.s32 1, %s6008_s13   ;;  %s6011_s21 = sld [smem:[#allocation7_spill]] }
 0xffb   : > { %p26_p8 = scmp.ge.s32.totalorder %s29_s28, 6   ;;  %s6012_s22 = sld [smem:[#allocation8_spill]] }
 0xffc   : > { %s6013_s23 = sld [smem:[#allocation18_spill]] }
 0xffd   : > { %s6014_s24 = sld [smem:[#allocation11_spill]]  ;;  %28 = sbr.rel (!%p26_p8) target bundleno = 18 (0x12), region = 182 }
 0xffe   : > { %s6015_s25 = sld [smem:[#allocation12_spill]] }
 0xfff   : > { %s6016_s26 = sld [smem:[#allocation14_spill]] }
0x1000   : > { %s6017_s27 = sld [smem:[#allocation16_spill]] }
0x1002   :  { %3943 = vsyncpa [#allocation4], 1 }
0x1003   :  { %3945 = vsyncpa [#allocation4 + $0x1], 1 }

</bundles_post_ra>
